<compile_context>
chip_gen: v7x
topology: tpu7x:2x2x1
jax: 0.10.0
libtpu: 0.0.40
codegen_flags: <defaults>
</compile_context>

<pallas_src>
import jax
import jax.numpy as jnp
import numpy as np
from jax.experimental import pallas as pl
from jax.experimental.pallas import tpu as pltpu


def _levi_civita():
    eps = np.zeros((3, 3, 3), np.float32)
    for (i, j, k), s in (((0, 1, 2), 1), ((1, 2, 0), 1), ((2, 0, 1), 1),
                         ((0, 2, 1), -1), ((2, 1, 0), -1), ((1, 0, 2), -1)):
        eps[i, j, k] = s
    return jnp.asarray(eps)


def _round_up(x, m):
    return -(-x // m) * m


_VMEM_BUDGET = 24 << 20   # target working set (tiles + weights, incl. lane pad, 2x buffered)
_VMEM_LIMIT = 40 << 20    # scoped-VMEM limit passed to Mosaic (fits v7x's 64 MiB/TC)


def _weight_vmem_bytes(f, cv, cd, itemsize):
    """Double-buffered VMEM footprint of the two resident (block-diag) weights."""
    return (_round_up(f * cd, 8) * _round_up(f * cv, 128)
            + _round_up(f * cv, 8) * _round_up(f * cd, 128)) * itemsize * 2


def _pick_fold(M, cv, cd, itemsize, max_fold, w_budget):
    """Smallest fold f (divisor of M, f <= max_fold) making the x_v/y_v slab at
    least one 128-lane vreg wide, with the folded weights inside their budget."""
    best = 1
    for f in range(1, max_fold + 1):
        if M % f or _weight_vmem_bytes(f, cv, cd, itemsize) > w_budget:
            continue
        best = f
        if f * cv >= 128:
            break
    return best


def _choose_tile_rows(Mf, sublane, target_rows, max_rows, prefer_split):
    """Folded-row tile that divides Mf and is sublane-aligned (or equals Mf).
    Returns None only if the padding fallback is unavoidable."""
    limit = min(Mf, max_rows)
    divs = [d for d in range(sublane, limit + 1, sublane) if Mf % d == 0]
    if prefer_split:                                  # >= 2 grid steps (v7x megacore)
        split = [d for d in divs if d <= min(target_rows, Mf // 2)]
        if split:
            return max(split)
    cands = [d for d in divs if d <= target_rows]
    if cands:
        return max(cands)
    if divs:
        return min(divs)
    if Mf <= max_rows:
        return Mf                                     # single full-extent tile (always legal)
    return None


def _chiral_kernel(xv_ref, xd_ref, bvd_ref, bdv_ref, yv_ref, yd_ref):
    """Two MXU matmuls per tile; eps + channel linears + fold precomposed in B_*."""
    yv_ref[...] = jnp.dot(xd_ref[...], bdv_ref[...],
                          preferred_element_type=jnp.float32).astype(yv_ref.dtype)
    yd_ref[...] = jnp.dot(xv_ref[...], bvd_ref[...],
                          preferred_element_type=jnp.float32).astype(yd_ref.dtype)


def chiral_mix(x_v, x_d, w_vd, w_dv, *, tile_m=4096, max_fold=8, slab_buffers=None):
    """ChiralMix forward.

    x_v : (..., V, 3), x_d : (..., D, 3, 3)
    w_vd: (D, V)  weight of lin_vd (VecLinear V -> D)
    w_dv: (V, D)  weight of lin_dv (VecLinear D -> V)
    Returns (y_v, y_d) = (lin_dv(eps_d2v(x_d)), eps_v2d(lin_vd(x_v))).
    """
    *rest, V, _ = x_v.shape
    D = x_d.shape[-3]
    M = int(np.prod(rest)) if rest else 1
    dt = x_v.dtype
    itemsize = jnp.dtype(dt).itemsize
    sublane = max(8, 32 // itemsize)                  # 8 (f32) / 16 (bf16) / 32 (8-bit)
    cv, cd = 3 * V, 9 * D

    # ---- lane-dense fold: (M, c) -> (M/f, f*c) is a free row-major reshape. ----
    f = _pick_fold(M, cv, cd, itemsize, max_fold, _VMEM_BUDGET // 3)
    Mf = M // f
    cvf, cdf = f * cv, f * cd

    # Free reshapes of the PyTorch-contiguous layout — no moveaxis/pad copies.
    xv = x_v.reshape(Mf, cvf)
    xd = x_d.reshape(Mf, cdf)

    eps = _levi_civita()
    # B_dv[(I,i,j),(o,k)] = eps[i,j,k] * W_dv[o,I]   (x_d slab -> y_v slab)
    b_dv = jnp.einsum('ijk,oI->Iijok', eps, w_dv.astype(jnp.float32)).reshape(cd, cv)
    # B_vd[(v,i),(O,k,j)] = eps[i,j,k] * W_vd[O,v]   (x_v slab -> y_d slab)
    b_vd = jnp.einsum('ijk,Ov->viOkj', eps, w_vd.astype(jnp.float32)).reshape(cv, cd)
    # Fold f rows of M into the channel axis => block-diagonal precomposed weights.
    eye_f = jnp.eye(f, dtype=jnp.float32)
    b_dv = jnp.kron(eye_f, b_dv).astype(dt)           # (cdf, cvf)
    b_vd = jnp.kron(eye_f, b_vd).astype(dt)           # (cvf, cdf)

    # ---- tile sizing against the VMEM budget (count 128-lane padding). ----
    cvf_pad, cdf_pad = _round_up(cvf, 128), _round_up(cdf, 128)
    row_bytes = (cvf_pad + cdf_pad) * itemsize * 2            # in + out, per folded row
    w_bytes = _weight_vmem_bytes(f, cv, cd, itemsize)
    max_rows = max(sublane, (_VMEM_BUDGET - w_bytes) // (row_bytes * 2))  # 2x double-buffer
    target_rows = max(sublane, min(tile_m // f, max_rows))
    prefer_split = Mf * row_bytes >= (4 << 20)                # worth >= 2 grid steps (v7x)

    tm = _choose_tile_rows(Mf, sublane, target_rows, max_rows, prefer_split)

    mf_pad = Mf
    if tm is None:
        # Rare fallback: no sublane-aligned divisor fits VMEM -> pad (extra HBM copy).
        tm = max(sublane, (min(target_rows, max_rows) // sublane) * sublane)
        mf_pad = _round_up(Mf, tm)
        xv = jnp.pad(xv, ((0, mf_pad - Mf), (0, 0)))
        xd = jnp.pad(xd, ((0, mf_pad - Mf), (0, 0)))

    grid = (mf_pad // tm,)
    cost = pl.CostEstimate(
        flops=4 * mf_pad * cvf * cdf,
        transcendentals=0,
        bytes_accessed=(2 * mf_pad * (cvf + cdf) + 2 * cvf * cdf) * itemsize)

    # Optional deeper pipelining on the streaming slabs (sweep if xprof shows
    # exposed DMA; default 2-deep).
    pm = dict(pipeline_mode=pl.Buffered(slab_buffers)) if slab_buffers else {}

    yv, yd = pl.pallas_call(
        _chiral_kernel,
        out_shape=(jax.ShapeDtypeStruct((mf_pad, cvf), dt),
                   jax.ShapeDtypeStruct((mf_pad, cdf), dt)),
        grid=grid,
        in_specs=[
            pl.BlockSpec((tm, cvf), lambda m: (m, 0), **pm),   # x_v slab (folded)
            pl.BlockSpec((tm, cdf), lambda m: (m, 0), **pm),   # x_d slab (folded)
            pl.BlockSpec((cvf, cdf), lambda m: (0, 0)),        # B_vd (resident)
            pl.BlockSpec((cdf, cvf), lambda m: (0, 0)),        # B_dv (resident)
        ],
        out_specs=(
            pl.BlockSpec((tm, cvf), lambda m: (m, 0), **pm),   # y_v slab (folded)
            pl.BlockSpec((tm, cdf), lambda m: (m, 0), **pm),   # y_d slab (folded)
        ),
        compiler_params=pltpu.CompilerParams(
            dimension_semantics=("parallel",),
            vmem_limit_bytes=_VMEM_LIMIT),
        cost_estimate=cost,
    )(xv, xd, b_vd, b_dv)

    if mf_pad != Mf:
        yv = yv[:Mf]
        yd = yd[:Mf]
    y_v = yv.reshape(*rest, V, 3)
    y_d = yd.reshape(*rest, D, 3, 3)
    return y_v, y_d


def reference(x_v, x_d, w_vd, w_dv):
    """Pure-JAX transcription of ChiralMix.forward (for validation)."""
    eps = _levi_civita()
    t = jnp.einsum('...Iij,ijk->...Ik', x_d, eps)          # eps_d2v(x_d)
    y_v = jnp.einsum('oI,...Ik->...ok', w_dv, t)           # lin_dv(...)
    u = jnp.einsum('Ov,...vi->...Oi', w_vd, x_v)           # lin_vd(x_v)
    y_d = jnp.einsum('...Oi,ijk->...Okj', u, eps)          # eps_v2d(...)
    return y_v, y_d


if __name__ == "__main__":
    key = jax.random.PRNGKey(0)
    dim_v, dim_d = 8, 16
    kv, kd, kw1, kw2, kv2, kd2 = jax.random.split(key, 6)

    # VecLinear self-init: std = fan_in ** -0.5, no bias.
    w_vd = jax.random.normal(kw1, (dim_d, dim_v), jnp.float32) * dim_v ** -0.5  # lin_vd: V -> D
    w_dv = jax.random.normal(kw2, (dim_v, dim_d), jnp.float32) * dim_d ** -0.5  # lin_dv: D -> V

    # Small primary check (single-tile path).
    B, N = 2, 16
    x_v = jax.random.normal(kv, (B, N, dim_v, 3), jnp.float32)
    x_d = jax.random.normal(kd, (B, N, dim_d, 3, 3), jnp.float32)
    y_v, y_d = chiral_mix(x_v, x_d, w_vd, w_dv)
    jax.block_until_ready((y_v, y_d))
    rv, rd = reference(x_v, x_d, w_vd, w_dv)
    np.testing.assert_allclose(np.asarray(y_v), np.asarray(rv), rtol=1e-5, atol=1e-5)
    np.testing.assert_allclose(np.asarray(y_d), np.asarray(rd), rtol=1e-5, atol=1e-5)

    # Secondary check exercising the multi-tile (grid > 1) pipelined path.
    B2, N2 = 2, 64
    x_v2 = jax.random.normal(kv2, (B2, N2, dim_v, 3), jnp.float32)
    x_d2 = jax.random.normal(kd2, (B2, N2, dim_d, 3, 3), jnp.float32)
    y_v2, y_d2 = chiral_mix(x_v2, x_d2, w_vd, w_dv, tile_m=32)
    jax.block_until_ready((y_v2, y_d2))
    rv2, rd2 = reference(x_v2, x_d2, w_vd, w_dv)
    np.testing.assert_allclose(np.asarray(y_v2), np.asarray(rv2), rtol=1e-5, atol=1e-5)
    np.testing.assert_allclose(np.asarray(y_d2), np.asarray(rd2), rtol=1e-5, atol=1e-5)

    print("KERNEL_OK")
</pallas_src>

<mosaic_0001>
module attributes {stable_mosaic.version = 11 : i64} {
  func.func @_chiral_kernel(%arg0: i32, %arg1: memref<4x192xf32, #tpu.memory_space<vmem>>, %arg2: memref<4x1152xf32, #tpu.memory_space<vmem>>, %arg3: memref<192x1152xf32, #tpu.memory_space<vmem>>, %arg4: memref<1152x192xf32, #tpu.memory_space<vmem>>, %arg5: memref<4x192xf32, #tpu.memory_space<vmem>>, %arg6: memref<4x1152xf32, #tpu.memory_space<vmem>>) attributes {dimension_semantics = [#tpu.dimension_semantics<parallel>], iteration_bounds = array<i64: 1>, scalar_prefetch = 0 : i64, scratch_operands = 0 : i64, tpu.core_type = #tpu.core_type<tc>, window_params = [{transform_indices = @transform_0, window_bounds = array<i64: 4, 192>}, {transform_indices = @transform_1, window_bounds = array<i64: 4, 1152>}, {pipeline_mode = #tpu.pipeline_mode<synchronous>, transform_indices = @transform_2, window_bounds = array<i64: 192, 1152>}, {pipeline_mode = #tpu.pipeline_mode<synchronous>, transform_indices = @transform_3, window_bounds = array<i64: 1152, 192>}, {transform_indices = @transform_4, window_bounds = array<i64: 4, 192>}, {transform_indices = @transform_5, window_bounds = array<i64: 4, 1152>}]} {
    %c0 = arith.constant 0 : index
    %c0_0 = arith.constant 0 : index
    %0 = vector.load %arg2[%c0, %c0_0] : memref<4x1152xf32, #tpu.memory_space<vmem>>, vector<4x1152xf32>
    %c0_1 = arith.constant 0 : index
    %c0_2 = arith.constant 0 : index
    %1 = vector.load %arg4[%c0_1, %c0_2] : memref<1152x192xf32, #tpu.memory_space<vmem>>, vector<1152x192xf32>
    %cst = arith.constant dense<0.000000e+00> : vector<4x192xf32>
    %2 = tpu.matmul %0, %1, %cst {dimension_numbers = #tpu.dot_dimension_numbers<[1], [0], [0], [1], [0, 0, 1, 1], [], []>} : vector<4x1152xf32>, vector<1152x192xf32>, vector<4x192xf32> -> vector<4x192xf32>
    %c0_3 = arith.constant 0 : index
    %c0_4 = arith.constant 0 : index
    %3 = vector.load %arg5[%c0_3, %c0_4] : memref<4x192xf32, #tpu.memory_space<vmem>>, vector<4x192xf32>
    tpu.vector_store %arg5[%c0_3, %c0_4], %2 {strides = array<i32>} : memref<4x192xf32, #tpu.memory_space<vmem>>, vector<4x192xf32>,
    %c0_5 = arith.constant 0 : index
    %c0_6 = arith.constant 0 : index
    %4 = vector.load %arg1[%c0_5, %c0_6] : memref<4x192xf32, #tpu.memory_space<vmem>>, vector<4x192xf32>
    %c0_7 = arith.constant 0 : index
    %c0_8 = arith.constant 0 : index
    %5 = vector.load %arg3[%c0_7, %c0_8] : memref<192x1152xf32, #tpu.memory_space<vmem>>, vector<192x1152xf32>
    %cst_9 = arith.constant dense<0.000000e+00> : vector<4x1152xf32>
    %6 = tpu.matmul %4, %5, %cst_9 {dimension_numbers = #tpu.dot_dimension_numbers<[1], [0], [0], [1], [0, 0, 1, 1], [], []>} : vector<4x192xf32>, vector<192x1152xf32>, vector<4x1152xf32> -> vector<4x1152xf32>
    %c0_10 = arith.constant 0 : index
    %c0_11 = arith.constant 0 : index
    %7 = vector.load %arg6[%c0_10, %c0_11] : memref<4x1152xf32, #tpu.memory_space<vmem>>, vector<4x1152xf32>
    tpu.vector_store %arg6[%c0_10, %c0_11], %6 {strides = array<i32>} : memref<4x1152xf32, #tpu.memory_space<vmem>>, vector<4x1152xf32>,
    return
  }
  func.func @transform_0(%arg0: i32) -> (i32, i32) {
    %c0_i32 = arith.constant 0 : i32
    %c0_i32_0 = arith.constant 0 : i32
    return %arg0, %c0_i32 : i32, i32
  }
  func.func @transform_1(%arg0: i32) -> (i32, i32) {
    %c0_i32 = arith.constant 0 : i32
    %c0_i32_0 = arith.constant 0 : i32
    return %arg0, %c0_i32 : i32, i32
  }
  func.func @transform_2(%arg0: i32) -> (i32, i32) {
    %c0_i32 = arith.constant 0 : i32
    %c0_i32_0 = arith.constant 0 : i32
    %c0_i32_1 = arith.constant 0 : i32
    return %c0_i32, %c0_i32_0 : i32, i32
  }
  func.func @transform_3(%arg0: i32) -> (i32, i32) {
    %c0_i32 = arith.constant 0 : i32
    %c0_i32_0 = arith.constant 0 : i32
    %c0_i32_1 = arith.constant 0 : i32
    return %c0_i32, %c0_i32_0 : i32, i32
  }
  func.func @transform_4(%arg0: i32) -> (i32, i32) {
    %c0_i32 = arith.constant 0 : i32
    %c0_i32_0 = arith.constant 0 : i32
    return %arg0, %c0_i32 : i32, i32
  }
  func.func @transform_5(%arg0: i32) -> (i32, i32) {
    %c0_i32 = arith.constant 0 : i32
    %c0_i32_0 = arith.constant 0 : i32
    return %arg0, %c0_i32 : i32, i32
  }
}

</mosaic_0001>

<bundles_post_ra>
// kernel: tpu_custom_call.1
= control target key start
LH: loop header
LB: loop body
LE: loop exit
PB: predicated region body
PF: predicated region fallthrough
CT: control target
= control target key end

     0   :  { %11 = vsyncpa [#allocation3], 0  ;;  %v1901_v7 = vmov 0.0   ;;  %vm908_vm0 = vcmask 523264   ;;  %s3550_s0 = inlined_call_operand.vmem [shape: f32[4,192], index: 0, kind: input, shape index: {}]   ;;  %s3551_s1 = inlined_call_operand.vmem [shape: f32[4,1152], index: 1, kind: input, shape index: {}]   ;;  %s3552_s2 = inlined_call_operand.vmem [shape: f32[192,1152], index: 2, kind: input, shape index: {}]   ;;  %s3553_s3 = inlined_call_operand.vmem [shape: f32[1152,192], index: 3, kind: input, shape index: {}]   ;;  %s3554_s4 = inlined_call_operand.hbm [shape: f32[4,192], index: 4, kind: output, shape index: {0}]   ;;  %s3555_s5 = inlined_call_operand.hbm [shape: f32[4,1152], index: 5, kind: output, shape index: {1}]  }
   0x1   :  { %v27_v0 = vld [vmem:[%s3553_s3 + $0x8] sm:$0xff]  ;;  %v29_v1 = vld [vmem:[%s3553_s3 + $0x18] sm:$0xff]  ;;  %v26_v5 = vld [vmem:[%s3553_s3] sm:$0xff]  ;;  %674 = vmatprep.mubr.f32.mxu1 %v1901_v7 }
   0x2   :  { %v283_v2 = vld [vmem:[%s3553_s3 + $0x808] sm:$0xff]  ;;  %v1319_v3 = vpack.c.bf16 %v29_v1, %v27_v0  ;;  %v285_v4 = vld [vmem:[%s3553_s3 + $0x818] sm:$0xff]  ;;  %v28_v6 = vld [vmem:[%s3553_s3 + $0x10] sm:$0xff] }
   0x3   :  { %v1575_v8 = vpack.c.bf16 %v285_v4, %v283_v2  ;;  %v1321_v9 = vpack.c.bf16 %v28_v6, %v26_v5  ;;  %v282_v10 = vld [vmem:[%s3553_s3 + $0x800] sm:$0xff]  ;;  %v284_v11 = vld [vmem:[%s3553_s3 + $0x810] sm:$0xff]  ;;  %v31_v12 = vld [vmem:[%s3553_s3 + $0x28] sm:$0xff] }
   0x4   :  { %1320 = vmatprep.subr.bf16.mxu0 %v1319_v3  ;;  %v1577_v13 = vpack.c.bf16 %v284_v11, %v282_v10  ;;  %v33_v14 = vld [vmem:[%s3553_s3 + $0x38] sm:$0xff]  ;;  %v287_v15 = vld [vmem:[%s3553_s3 + $0x828] sm:$0xff]  ;;  %v30_v19 = vld [vmem:[%s3553_s3 + $0x20] sm:$0xff] }
   0x5   :  { %v289_v16 = vld [vmem:[%s3553_s3 + $0x838] sm:$0xff]  ;;  %1576 = vmatprep.subr.bf16.mxu1 %v1575_v8  ;;  %1322 = vmatpush1.bf16.msra.mxu0 %v1321_v9  ;;  %v1323_v17 = vpack.c.bf16 %v33_v14, %v31_v12  ;;  %v32_v20 = vld [vmem:[%s3553_s3 + $0x30] sm:$0xff]  ;;  %v286_v21 = vld [vmem:[%s3553_s3 + $0x820] sm:$0xff] }
   0x6   :  { %v1579_v18 = vpack.c.bf16 %v289_v16, %v287_v15  ;;  %1578 = vmatpush1.bf16.msra.mxu1 %v1577_v13  ;;  %v1325_v22 = vpack.c.bf16 %v32_v20, %v30_v19  ;;  %v288_v23 = vld [vmem:[%s3553_s3 + $0x830] sm:$0xff]  ;;  %v35_v24 = vld [vmem:[%s3553_s3 + $0x48] sm:$0xff]  ;;  %v37_v25 = vld [vmem:[%s3553_s3 + $0x58] sm:$0xff] }
   0x7   :  { %1324 = vmatprep.subr.bf16.mxu0 %v1323_v17  ;;  %v1581_v26 = vpack.c.bf16 %v288_v23, %v286_v21  ;;  %v1327_v27 = vpack.c.bf16 %v37_v25, %v35_v24  ;;  %v291_v28 = vld [vmem:[%s3553_s3 + $0x848] sm:$0xff]  ;;  %v293_v29 = vld [vmem:[%s3553_s3 + $0x858] sm:$0xff]  ;;  %v34_v30 = vld [vmem:[%s3553_s3 + $0x40] sm:$0xff] }
   0x8   :  { %1580 = vmatprep.subr.bf16.mxu1 %v1579_v18  ;;  %v1583_v31 = vpack.c.bf16 %v293_v29, %v291_v28  ;;  %v36_v32 = vld [vmem:[%s3553_s3 + $0x50] sm:$0xff]  ;;  %v290_v33 = vld [vmem:[%s3553_s3 + $0x840] sm:$0xff]  ;;  %v39_v36 = vld [vmem:[%s3553_s3 + $0x68] sm:$0xff] }
   0x9   :  { %v292_v34 = vld [vmem:[%s3553_s3 + $0x850] sm:$0xff]  ;;  %1326 = vmatpush1.bf16.msra.mxu0 %v1325_v22  ;;  %v1329_v35 = vpack.c.bf16 %v36_v32, %v34_v30  ;;  %v41_v37 = vld [vmem:[%s3553_s3 + $0x78] sm:$0xff]  ;;  %v295_v38 = vld [vmem:[%s3553_s3 + $0x868] sm:$0xff] }
   0xa   :  { %1582 = vmatpush1.bf16.msra.mxu1 %v1581_v26  ;;  %1328 = vmatprep.subr.bf16.mxu0 %v1327_v27  ;;  %v1585_v39 = vpack.c.bf16 %v292_v34, %v290_v33  ;;  %v1331_v40 = vpack.c.bf16 %v41_v37, %v39_v36  ;;  %v297_v41 = vld [vmem:[%s3553_s3 + $0x878] sm:$0xff]  ;;  %v38_v42 = vld [vmem:[%s3553_s3 + $0x60] sm:$0xff]  ;;  %v40_v43 = vld [vmem:[%s3553_s3 + $0x70] sm:$0xff] }
   0xb   :  { %1584 = vmatprep.subr.bf16.mxu1 %v1583_v31  ;;  %v1587_v44 = vpack.c.bf16 %v297_v41, %v295_v38  ;;  %v294_v45 = vld [vmem:[%s3553_s3 + $0x860] sm:$0xff]  ;;  %v296_v46 = vld [vmem:[%s3553_s3 + $0x870] sm:$0xff]  ;;  %v43_v47 = vld [vmem:[%s3553_s3 + $0x88] sm:$0xff]  ;;  %v1333_v51 = vpack.c.bf16 %v40_v43, %v38_v42 }
   0xc   :  { %v45_v48 = vld [vmem:[%s3553_s3 + $0x98] sm:$0xff]  ;;  %v299_v49 = vld [vmem:[%s3553_s3 + $0x888] sm:$0xff]  ;;  %v1589_v52 = vpack.c.bf16 %v296_v46, %v294_v45  ;;  %v42_v54 = vld [vmem:[%s3553_s3 + $0x80] sm:$0xff] }
   0xd   :  { %v301_v50 = vld [vmem:[%s3553_s3 + $0x898] sm:$0xff]  ;;  %1330 = vmatpush1.bf16.msra.mxu0 %v1329_v35  ;;  %v1335_v53 = vpack.c.bf16 %v45_v48, %v43_v47  ;;  %v44_v55 = vld [vmem:[%s3553_s3 + $0x90] sm:$0xff]  ;;  %v298_v56 = vld [vmem:[%s3553_s3 + $0x880] sm:$0xff] }
   0xe   :  { %1586 = vmatpush1.bf16.msra.mxu1 %v1585_v39  ;;  %1332 = vmatprep.subr.bf16.mxu0 %v1331_v40  ;;  %v1591_v57 = vpack.c.bf16 %v301_v50, %v299_v49  ;;  %v300_v58 = vld [vmem:[%s3553_s3 + $0x890] sm:$0xff]  ;;  %v47_v59 = vld [vmem:[%s3553_s3 + $0xa8] sm:$0xff]  ;;  %v49_v60 = vld [vmem:[%s3553_s3 + $0xb8] sm:$0xff]  ;;  %v1337_v63 = vpack.c.bf16 %v44_v55, %v42_v54 }
   0xf   :  { %1588 = vmatprep.subr.bf16.mxu1 %v1587_v44  ;;  %v303_v61 = vld [vmem:[%s3553_s3 + $0x8a8] sm:$0xff]  ;;  %v305_v62 = vld [vmem:[%s3553_s3 + $0x8b8] sm:$0xff]  ;;  %v1593_v0 = vpack.c.bf16 %v300_v58, %v298_v56  ;;  %v1339_v1 = vpack.c.bf16 %v49_v60, %v47_v59  ;;  %v46_v2 = vld [vmem:[%s3553_s3 + $0xa0] sm:$0xff] }
  0x10   :  { %v48_v3 = vld [vmem:[%s3553_s3 + $0xb0] sm:$0xff]  ;;  %v302_v4 = vld [vmem:[%s3553_s3 + $0x8a0] sm:$0xff]  ;;  %v1595_v5 = vpack.c.bf16 %v305_v62, %v303_v61  ;;  %v51_v7 = vld [vmem:[%s3553_s3 + $0xc8] sm:$0xff] }
  0x11   :  { %1334 = vmatpush1.bf16.msra.mxu0 %v1333_v51  ;;  %v304_v6 = vld [vmem:[%s3553_s3 + $0x8b0] sm:$0xff]  ;;  %v53_v8 = vld [vmem:[%s3553_s3 + $0xd8] sm:$0xff]  ;;  %v307_v9 = vld [vmem:[%s3553_s3 + $0x8c8] sm:$0xff]  ;;  %v1341_v11 = vpack.c.bf16 %v48_v3, %v46_v2 }
  0x12   :  { %1590 = vmatpush1.bf16.msra.mxu1 %v1589_v52  ;;  %1336 = vmatprep.subr.bf16.mxu0 %v1335_v53  ;;  %v309_v10 = vld [vmem:[%s3553_s3 + $0x8d8] sm:$0xff]  ;;  %v1597_v12 = vpack.c.bf16 %v304_v6, %v302_v4  ;;  %v1343_v13 = vpack.c.bf16 %v53_v8, %v51_v7  ;;  %v50_v14 = vld [vmem:[%s3553_s3 + $0xc0] sm:$0xff]  ;;  %v52_v15 = vld [vmem:[%s3553_s3 + $0xd0] sm:$0xff] }
  0x13   :  { %1592 = vmatprep.subr.bf16.mxu1 %v1591_v57  ;;  %v306_v16 = vld [vmem:[%s3553_s3 + $0x8c0] sm:$0xff]  ;;  %v1599_v17 = vpack.c.bf16 %v309_v10, %v307_v9  ;;  %v308_v18 = vld [vmem:[%s3553_s3 + $0x8d0] sm:$0xff]  ;;  %v55_v19 = vld [vmem:[%s3553_s3 + $0xe8] sm:$0xff]  ;;  %v1345_v23 = vpack.c.bf16 %v52_v15, %v50_v14 }
  0x14   :  { %v57_v20 = vld [vmem:[%s3553_s3 + $0xf8] sm:$0xff]  ;;  %v311_v21 = vld [vmem:[%s3553_s3 + $0x8e8] sm:$0xff]  ;;  %v1601_v24 = vpack.c.bf16 %v308_v18, %v306_v16  ;;  %v54_v26 = vld [vmem:[%s3553_s3 + $0xe0] sm:$0xff] }
  0x15   :  { %1338 = vmatpush1.bf16.msra.mxu0 %v1337_v63  ;;  %v313_v22 = vld [vmem:[%s3553_s3 + $0x8f8] sm:$0xff]  ;;  %v1347_v25 = vpack.c.bf16 %v57_v20, %v55_v19  ;;  %v56_v27 = vld [vmem:[%s3553_s3 + $0xf0] sm:$0xff]  ;;  %v310_v28 = vld [vmem:[%s3553_s3 + $0x8e0] sm:$0xff] }
  0x16   :  { %1594 = vmatpush1.bf16.msra.mxu1 %v1593_v0  ;;  %1340 = vmatprep.subr.bf16.mxu0 %v1339_v1  ;;  %v1603_v29 = vpack.c.bf16 %v313_v22, %v311_v21  ;;  %v312_v30 = vld [vmem:[%s3553_s3 + $0x8f0] sm:$0xff]  ;;  %v59_v31 = vld [vmem:[%s3553_s3 + $0x108] sm:$0xff]  ;;  %v61_v32 = vld [vmem:[%s3553_s3 + $0x118] sm:$0xff]  ;;  %v1349_v35 = vpack.c.bf16 %v56_v27, %v54_v26 }
  0x17   :  { %1596 = vmatprep.subr.bf16.mxu1 %v1595_v5  ;;  %v691_v33 = vld [vmem:[%s3552_s2 + $0x8] sm:$0xff]  ;;  %v700_v34 = vld [vmem:[%s3552_s2 + $0x50] sm:$0xff]  ;;  %v1605_v36 = vpack.c.bf16 %v312_v30, %v310_v28  ;;  %v1351_v37 = vpack.c.bf16 %v61_v32, %v59_v31  ;;  %v58_v38 = vld [vmem:[%s3553_s3 + $0x100] sm:$0xff] }
  0x18   :  { %v60_v39 = vld [vmem:[%s3553_s3 + $0x110] sm:$0xff]  ;;  %v690_v40 = vld [vmem:[%s3552_s2] sm:$0xff]  ;;  %v1607_v41 = vpack.c.bf16 %v700_v34, %v691_v33  ;;  %v699_v42 = vld [vmem:[%s3552_s2 + $0x48] sm:$0xff] }
  0x19   :  { %1342 = vmatpush1.bf16.msra.mxu0 %v1341_v11  ;;  %v63_v43 = vld [vmem:[%s3553_s3 + $0x128] sm:$0xff]  ;;  %v65_v44 = vld [vmem:[%s3553_s3 + $0x138] sm:$0xff]  ;;  %v718_v46 = vld [vmem:[%s3552_s2 + $0xe0] sm:$0xff]  ;;  %v1353_v48 = vpack.c.bf16 %v60_v39, %v58_v38  ;;  %v1609_v49 = vpack.c.bf16 %v699_v42, %v690_v40 }
  0x1a   :  { %1598 = vmatpush1.bf16.msra.mxu1 %v1597_v12  ;;  %1344 = vmatprep.subr.bf16.mxu0 %v1343_v13  ;;  %v709_v45 = vld [vmem:[%s3552_s2 + $0x98] sm:$0xff]  ;;  %v25_v47 = vld [vmem:[%s3551_s1 + $0x20] sm:$0xf]  ;;  %v1355_v50 = vpack.c.bf16 %v65_v44, %v63_v43  ;;  %v64_v52 = vld [vmem:[%s3553_s3 + $0x130] sm:$0xff] }
  0x1b   :  { %1600 = vmatprep.subr.bf16.mxu1 %v1599_v17  ;;  %v62_v51 = vld [vmem:[%s3553_s3 + $0x120] sm:$0xff]  ;;  %v708_v53 = vld [vmem:[%s3552_s2 + $0x90] sm:$0xff]  ;;  %v1611_v54 = vpack.c.bf16 %v718_v46, %v709_v45  ;;  %v717_v55 = vld [vmem:[%s3552_s2 + $0xd8] sm:$0xff] }
  0x1c   :  { %v67_v56 = vld [vmem:[%s3553_s3 + $0x148] sm:$0xff]  ;;  %v69_v57 = vld [vmem:[%s3553_s3 + $0x158] sm:$0xff]  ;;  %v736_v59 = vld [vmem:[%s3552_s2 + $0x170] sm:$0xff]  ;;  %v1357_v60 = vpack.c.bf16 %v64_v52, %v62_v51  ;;  %v1613_v61 = vpack.c.bf16 %v717_v55, %v708_v53 }
  0x1d   :  { %1346 = vmatpush1.bf16.msra.mxu0 %v1345_v23  ;;  %v727_v58 = vld [vmem:[%s3552_s2 + $0x128] sm:$0xff]  ;;  %v1359_v62 = vpack.c.bf16 %v69_v57, %v67_v56  ;;  %v66_v63 = vld [vmem:[%s3553_s3 + $0x140] sm:$0xff]  ;;  %v68_v0 = vld [vmem:[%s3553_s3 + $0x150] sm:$0xff] }
  0x1e   :  { %1602 = vmatpush1.bf16.msra.mxu1 %v1601_v24  ;;  %1348 = vmatprep.subr.bf16.mxu0 %v1347_v25  ;;  %v726_v1 = vld [vmem:[%s3552_s2 + $0x120] sm:$0xff]  ;;  %v1615_v2 = vpack.c.bf16 %v736_v59, %v727_v58  ;;  %v735_v3 = vld [vmem:[%s3552_s2 + $0x168] sm:$0xff]  ;;  %v73_v5 = vld [vmem:[%s3553_s3 + $0x178] sm:$0xff]  ;;  %v1361_v8 = vpack.c.bf16 %v68_v0, %v66_v63 }
  0x1f   :  { %1604 = vmatprep.subr.bf16.mxu1 %v1603_v29  ;;  %v71_v4 = vld [vmem:[%s3553_s3 + $0x168] sm:$0xff]  ;;  %v745_v6 = vld [vmem:[%s3552_s2 + $0x1b8] sm:$0xff]  ;;  %v754_v7 = vld [vmem:[%s3552_s2 + $0x200] sm:$0xff]  ;;  %v1617_v9 = vpack.c.bf16 %v735_v3, %v726_v1 }
  0x20   :  { %v1363_v10 = vpack.c.bf16 %v73_v5, %v71_v4  ;;  %v70_v11 = vld [vmem:[%s3553_s3 + $0x160] sm:$0xff]  ;;  %v72_v12 = vld [vmem:[%s3553_s3 + $0x170] sm:$0xff]  ;;  %v1619_v14 = vpack.c.bf16 %v754_v7, %v745_v6  ;;  %v753_v15 = vld [vmem:[%s3552_s2 + $0x1f8] sm:$0xff] }
  0x21   :  { %1350 = vmatpush1.bf16.msra.mxu0 %v1349_v35  ;;  %v744_v13 = vld [vmem:[%s3552_s2 + $0x1b0] sm:$0xff]  ;;  %v75_v16 = vld [vmem:[%s3553_s3 + $0x188] sm:$0xff]  ;;  %v77_v17 = vld [vmem:[%s3553_s3 + $0x198] sm:$0xff]  ;;  %v1365_v21 = vpack.c.bf16 %v72_v12, %v70_v11 }
  0x22   :  { %1606 = vmatpush1.bf16.msra.mxu1 %v1605_v36  ;;  %1352 = vmatprep.subr.bf16.mxu0 %v1351_v37  ;;  %v763_v18 = vld [vmem:[%s3552_s2 + $0x248] sm:$0xff]  ;;  %v772_v19 = vld [vmem:[%s3552_s2 + $0x290] sm:$0xff]  ;;  %v2241_v20 = vld [vmem:[%s3551_s1] sm:$0xff]  ;;  %v1621_v23 = vpack.c.bf16 %v753_v15, %v744_v13  ;;  %v1367_v24 = vpack.c.bf16 %v77_v17, %v75_v16 }
  0x23   :  { %1608 = vmatprep.subr.bf16.mxu1 %v1607_v41  ;;  %v318_v22 = vcombine.high %v2241_v20, %v2241_v20  ;;  %v74_v25 = vld [vmem:[%s3553_s3 + $0x180] sm:$0xff]  ;;  %v76_v26 = vld [vmem:[%s3553_s3 + $0x190] sm:$0xff]  ;;  %v1623_v28 = vpack.c.bf16 %v772_v19, %v763_v18  ;;  %v771_v29 = vld [vmem:[%s3552_s2 + $0x288] sm:$0xff] }
  0x24   :  { %v762_v27 = vld [vmem:[%s3552_s2 + $0x240] sm:$0xff]  ;;  %v79_v30 = vld [vmem:[%s3553_s3 + $0x1a8] sm:$0xff]  ;;  %v81_v31 = vld [vmem:[%s3553_s3 + $0x1b8] sm:$0xff]  ;;  %v1369_v34 = vpack.c.bf16 %v76_v26, %v74_v25 }
  0x25   :  { %675 = vmatmul.mubr.f32.vlgmr.msra.gmra.mrb[0].mxu1 %v25_v47  ;;  %1354 = vmatpush1.bf16.msra.mxu0 %v1353_v48  ;;  %v781_v32 = vld [vmem:[%s3552_s2 + $0x2d8] sm:$0xff]  ;;  %v790_v33 = vld [vmem:[%s3552_s2 + $0x320] sm:$0xff]  ;;  %v1625_v35 = vpack.c.bf16 %v771_v29, %v762_v27  ;;  %v1371_v36 = vpack.c.bf16 %v81_v31, %v79_v30  ;;  %v80_v38 = vld [vmem:[%s3553_s3 + $0x1b0] sm:$0xff] }
  0x26   :  { %1610 = vmatpush1.bf16.msra.mxu1 %v1609_v49  ;;  %1356 = vmatprep.subr.bf16.mxu0 %v1355_v50  ;;  %v78_v37 = vld [vmem:[%s3553_s3 + $0x1a0] sm:$0xff]  ;;  %v780_v39 = vld [vmem:[%s3552_s2 + $0x2d0] sm:$0xff]  ;;  %v1627_v40 = vpack.c.bf16 %v790_v33, %v781_v32  ;;  %v789_v41 = vld [vmem:[%s3552_s2 + $0x318] sm:$0xff] }
  0x27   :  { %1612 = vmatprep.subr.bf16.mxu1 %v1611_v54  ;;  %390 = vmatprep.mubr.f32.mxu0 %v318_v22  ;;  %v83_v42 = vld [vmem:[%s3553_s3 + $0x1c8] sm:$0xff]  ;;  %v85_v43 = vld [vmem:[%s3553_s3 + $0x1d8] sm:$0xff]  ;;  %v808_v45 = vld [vmem:[%s3552_s2 + $0x3b0] sm:$0xff]  ;;  %v1373_v46 = vpack.c.bf16 %v80_v38, %v78_v37  ;;  %v1629_v48 = vpack.c.bf16 %v789_v41, %v780_v39 }
  0x28   :  { %v799_v44 = vld [vmem:[%s3552_s2 + $0x368] sm:$0xff]  ;;  %v82_v47 = vld [vmem:[%s3553_s3 + $0x1c0] sm:$0xff]  ;;  %v1375_v49 = vpack.c.bf16 %v85_v43, %v83_v42  ;;  %v84_v50 = vld [vmem:[%s3553_s3 + $0x1d0] sm:$0xff] }
  0x29   :  { %1358 = vmatpush1.bf16.msra.mxu0 %v1357_v60  ;;  %v798_v51 = vld [vmem:[%s3552_s2 + $0x360] sm:$0xff]  ;;  %v807_v52 = vld [vmem:[%s3552_s2 + $0x3a8] sm:$0xff]  ;;  %v1631_v53 = vpack.c.bf16 %v808_v45, %v799_v44  ;;  %v89_v55 = vld [vmem:[%s3553_s3 + $0x1f8] sm:$0xff]  ;;  %v1377_v60 = vpack.c.bf16 %v84_v50, %v82_v47 }
  0x2a   :  { %1614 = vmatpush1.bf16.msra.mxu1 %v1613_v61  ;;  %1360 = vmatprep.subr.bf16.mxu0 %v1359_v62  ;;  %v87_v54 = vld [vmem:[%s3553_s3 + $0x1e8] sm:$0xff]  ;;  %v2314_v56 = vld [vmem:[%s3550_s0] sm:$0xff]  ;;  %v817_v57 = vld [vmem:[%s3552_s2 + $0x3f8] sm:$0xff]  ;;  %v1633_v61 = vpack.c.bf16 %v807_v52, %v798_v51 }
  0x2b   :  { %1616 = vmatprep.subr.bf16.mxu1 %v1615_v2  ;;  %v826_v58 = vld [vmem:[%s3552_s2 + $0x440] sm:$0xff]  ;;  %v2324_v59 = vcombine.high %v2314_v56, %v2314_v56  ;;  %v1379_v62 = vpack.c.bf16 %v89_v55, %v87_v54  ;;  %v88_v0 = vld [vmem:[%s3553_s3 + $0x1f0] sm:$0xff]  ;;  %v825_v3 = vld [vmem:[%s3552_s2 + $0x438] sm:$0xff] }
  0x2c   :  { %v86_v63 = vld [vmem:[%s3553_s3 + $0x1e0] sm:$0xff]  ;;  %v816_v1 = vld [vmem:[%s3552_s2 + $0x3f0] sm:$0xff]  ;;  %v1635_v2 = vpack.c.bf16 %v826_v58, %v817_v57  ;;  %v91_v4 = vld [vmem:[%s3553_s3 + $0x208] sm:$0xff] }
  0x2d   :  { %1362 = vmatpush1.bf16.msra.mxu0 %v1361_v8  ;;  %v93_v5 = vld [vmem:[%s3553_s3 + $0x218] sm:$0xff]  ;;  %1314 = vmatprep.mubr.msk.f32.mxu1 %vm908_vm0, %v2324_v59  ;;  %v835_v6 = vld [vmem:[%s3552_s2 + $0x488] sm:$0xff]  ;;  %v844_v7 = vld [vmem:[%s3552_s2 + $0x4d0] sm:$0xff]  ;;  %v1381_v8 = vpack.c.bf16 %v88_v0, %v86_v63 }
  0x2e   :  { %1618 = vmatpush1.bf16.msra.mxu1 %v1617_v9  ;;  %1364 = vmatprep.subr.bf16.mxu0 %v1363_v10  ;;  %v1637_v9 = vpack.c.bf16 %v825_v3, %v816_v1  ;;  %v1383_v10 = vpack.c.bf16 %v93_v5, %v91_v4  ;;  %v90_v11 = vld [vmem:[%s3553_s3 + $0x200] sm:$0xff]  ;;  %v92_v12 = vld [vmem:[%s3553_s3 + $0x210] sm:$0xff]  ;;  %v843_v15 = vld [vmem:[%s3552_s2 + $0x4c8] sm:$0xff] }
  0x2f   :  { %1620 = vmatprep.subr.bf16.mxu1 %v1619_v14  ;;  %v834_v13 = vld [vmem:[%s3552_s2 + $0x480] sm:$0xff]  ;;  %v1639_v14 = vpack.c.bf16 %v844_v7, %v835_v6  ;;  %v95_v16 = vld [vmem:[%s3553_s3 + $0x228] sm:$0xff]  ;;  %v97_v17 = vld [vmem:[%s3553_s3 + $0x238] sm:$0xff] }
  0x30   :  { %v853_v18 = vld [vmem:[%s3552_s2 + $0x518] sm:$0xff]  ;;  %v862_v19 = vld [vmem:[%s3552_s2 + $0x560] sm:$0xff]  ;;  %v1641_v22 = vpack.c.bf16 %v843_v15, %v834_v13  ;;  %v96_v25 = vld [vmem:[%s3553_s3 + $0x230] sm:$0xff] }
  0x31   :  { %1366 = vmatpush1.bf16.msra.mxu0 %v1365_v21  ;;  %v1385_v21 = vpack.c.bf16 %v92_v12, %v90_v11  ;;  %v852_v26 = vld [vmem:[%s3552_s2 + $0x510] sm:$0xff]  ;;  %v1643_v27 = vpack.c.bf16 %v862_v19, %v853_v18  ;;  %v99_v29 = vld [vmem:[%s3553_s3 + $0x248] sm:$0xff]  ;;  %v101_v30 = vld [vmem:[%s3553_s3 + $0x258] sm:$0xff] }
  0x32   :  { %1622 = vmatpush1.bf16.msra.mxu1 %v1621_v23  ;;  %1368 = vmatprep.subr.bf16.mxu0 %v1367_v24  ;;  %v1387_v23 = vpack.c.bf16 %v97_v17, %v95_v16  ;;  %v94_v24 = vld [vmem:[%s3553_s3 + $0x220] sm:$0xff]  ;;  %v871_v31 = vld [vmem:[%s3552_s2 + $0x5a8] sm:$0xff]  ;;  %v880_v32 = vld [vmem:[%s3552_s2 + $0x5f0] sm:$0xff] }
  0x33   :  { %1624 = vmatprep.subr.bf16.mxu1 %v1623_v28  ;;  %v861_v28 = vld [vmem:[%s3552_s2 + $0x558] sm:$0xff]  ;;  %v1389_v33 = vpack.c.bf16 %v96_v25, %v94_v24  ;;  %v870_v37 = vld [vmem:[%s3552_s2 + $0x5a0] sm:$0xff]  ;;  %v1647_v38 = vpack.c.bf16 %v880_v32, %v871_v31  ;;  %v879_v39 = vld [vmem:[%s3552_s2 + $0x5e8] sm:$0xff] }
  0x34   :  { %v105_v41 = vld [vmem:[%s3553_s3 + $0x278] sm:$0xff]  ;;  %v898_v43 = vld [vmem:[%s3552_s2 + $0x680] sm:$0xff]  ;;  %v1649_v45 = vpack.c.bf16 %v879_v39, %v870_v37  ;;  %v107_v52 = vld [vmem:[%s3553_s3 + $0x288] sm:$0xff] }
  0x35   :  { %1370 = vmatpush1.bf16.msra.mxu0 %v1369_v34  ;;  %v1645_v34 = vpack.c.bf16 %v861_v28, %v852_v26  ;;  %v889_v42 = vld [vmem:[%s3552_s2 + $0x638] sm:$0xff]  ;;  %v102_v47 = vld [vmem:[%s3553_s3 + $0x260] sm:$0xff]  ;;  %v692_v63 = vld [vmem:[%s3552_s2 + $0x10] sm:$0xff] }
  0x36   :  { %1626 = vmatpush1.bf16.msra.mxu1 %v1625_v35  ;;  %1372 = vmatprep.subr.bf16.mxu0 %v1371_v36  ;;  %v1391_v35 = vpack.c.bf16 %v101_v30, %v99_v29  ;;  %v98_v36 = vld [vmem:[%s3553_s3 + $0x240] sm:$0xff]  ;;  %v1651_v50 = vpack.c.bf16 %v898_v43, %v889_v42  ;;  %v897_v51 = vld [vmem:[%s3552_s2 + $0x678] sm:$0xff]  ;;  %v711_v4 = vld [vmem:[%s3552_s2 + $0xa8] sm:$0xff] }
  0x37   :  { %1628 = vmatprep.subr.bf16.mxu1 %v1627_v40  ;;  %v103_v40 = vld [vmem:[%s3553_s3 + $0x268] sm:$0xff]  ;;  %v693_v54 = vld [vmem:[%s3552_s2 + $0x18] sm:$0xff]  ;;  %v702_v55 = vld [vmem:[%s3552_s2 + $0x60] sm:$0xff] }
  0x38   :  { %v1655_v0 = vpack.c.bf16 %v702_v55, %v693_v54  ;;  %v701_v1 = vld [vmem:[%s3552_s2 + $0x58] sm:$0xff]  ;;  %v720_v5 = vld [vmem:[%s3552_s2 + $0xf0] sm:$0xff]  ;;  %v710_v11 = vld [vmem:[%s3552_s2 + $0xa0] sm:$0xff] }
  0x39   :  { %1374 = vmatpush1.bf16.msra.mxu0 %v1373_v46  ;;  %v1395_v46 = vpack.c.bf16 %v105_v41, %v103_v40  ;;  %v113_v3 = vld [vmem:[%s3553_s3 + $0x2b8] sm:$0xff]  ;;  %v1657_v7 = vpack.c.bf16 %v701_v1, %v692_v63  ;;  %v1659_v12 = vpack.c.bf16 %v720_v5, %v711_v4  ;;  %v719_v13 = vld [vmem:[%s3552_s2 + $0xe8] sm:$0xff]  ;;  %v738_v17 = vld [vmem:[%s3552_s2 + $0x180] sm:$0xff] }
  0x3a   :  { %1630 = vmatpush1.bf16.msra.mxu1 %v1629_v48  ;;  %1376 = vmatprep.subr.bf16.mxu0 %v1375_v49  ;;  %v104_v48 = vld [vmem:[%s3553_s3 + $0x270] sm:$0xff]  ;;  %v117_v15 = vld [vmem:[%s3553_s3 + $0x2d8] sm:$0xff]  ;;  %v114_v19 = vld [vmem:[%s3553_s3 + $0x2c0] sm:$0xff] }
  0x3b   :  { %1632 = vmatprep.subr.bf16.mxu1 %v1631_v53  ;;  %v888_v49 = vld [vmem:[%s3552_s2 + $0x630] sm:$0xff]  ;;  %v109_v53 = vld [vmem:[%s3553_s3 + $0x298] sm:$0xff]  ;;  %v1397_v57 = vpack.c.bf16 %v104_v48, %v102_v47  ;;  %v2521_v29 = vld [vmem:[%s3551_s1 + $0x8] sm:$0xff] }
  0x3c   :  { %v1653_v58 = vpack.c.bf16 %v897_v51, %v888_v49  ;;  %v729_v16 = vld [vmem:[%s3552_s2 + $0x138] sm:$0xff]  ;;  %v728_v24 = vld [vmem:[%s3552_s2 + $0x130] sm:$0xff]  ;;  %v747_v30 = vld [vmem:[%s3552_s2 + $0x1c8] sm:$0xff]  ;;  %v319_v32 = vcombine.high %v2521_v29, %v2521_v29 }
  0x3d   :  { %1378 = vmatpush1.bf16.msra.mxu0 %v1377_v60  ;;  %v1399_v60 = vpack.c.bf16 %v109_v53, %v107_v52  ;;  %v737_v25 = vld [vmem:[%s3552_s2 + $0x178] sm:$0xff]  ;;  %v1663_v26 = vpack.c.bf16 %v738_v17, %v729_v16  ;;  %v756_v31 = vld [vmem:[%s3552_s2 + $0x210] sm:$0xff]  ;;  %v746_v37 = vld [vmem:[%s3552_s2 + $0x1c0] sm:$0xff] }
  0x3e   :  { %1634 = vmatpush1.bf16.msra.mxu1 %v1633_v61  ;;  %1380 = vmatprep.subr.bf16.mxu0 %v1379_v62  ;;  %v106_v61 = vld [vmem:[%s3553_s3 + $0x280] sm:$0xff]  ;;  %v108_v62 = vld [vmem:[%s3553_s3 + $0x290] sm:$0xff]  ;;  %v121_v28 = vld [vmem:[%s3553_s3 + $0x2f8] sm:$0xff] }
  0x3f   :  { %1636 = vmatprep.subr.bf16.mxu1 %v1635_v2  ;;  %v111_v2 = vld [vmem:[%s3553_s3 + $0x2a8] sm:$0xff]  ;;  %v1401_v6 = vpack.c.bf16 %v108_v62, %v106_v61  ;;  %v125_v41 = vld [vmem:[%s3553_s3 + $0x318] sm:$0xff]  ;;  %v774_v43 = vld [vmem:[%s3552_s2 + $0x2a0] sm:$0xff] }
  0x40   :  { %v755_v39 = vld [vmem:[%s3552_s2 + $0x208] sm:$0xff]  ;;  %v765_v42 = vld [vmem:[%s3552_s2 + $0x258] sm:$0xff]  ;;  %v122_v47 = vld [vmem:[%s3553_s3 + $0x300] sm:$0xff] }
  0x41   :  { %1382 = vmatpush1.bf16.msra.mxu0 %v1381_v8  ;;  %v1403_v8 = vpack.c.bf16 %v113_v3, %v111_v2  ;;  %v123_v40 = vld [vmem:[%s3553_s3 + $0x308] sm:$0xff]  ;;  %v124_v48 = vld [vmem:[%s3553_s3 + $0x310] sm:$0xff]  ;;  %v773_v51 = vld [vmem:[%s3552_s2 + $0x298] sm:$0xff] }
  0x42   :  { %1638 = vmatpush1.bf16.msra.mxu1 %v1637_v9  ;;  %1384 = vmatprep.subr.bf16.mxu0 %v1383_v10  ;;  %v110_v9 = vld [vmem:[%s3553_s3 + $0x2a0] sm:$0xff]  ;;  %v112_v10 = vld [vmem:[%s3553_s3 + $0x2b0] sm:$0xff]  ;;  %v127_v52 = vld [vmem:[%s3553_s3 + $0x328] sm:$0xff] }
  0x43   :  { %1640 = vmatprep.subr.bf16.mxu1 %v1639_v14  ;;  %v115_v14 = vld [vmem:[%s3553_s3 + $0x2c8] sm:$0xff]  ;;  %v1405_v18 = vpack.c.bf16 %v112_v10, %v110_v9  ;;  %v764_v49 = vld [vmem:[%s3552_s2 + $0x250] sm:$0xff]  ;;  %v129_v53 = vld [vmem:[%s3553_s3 + $0x338] sm:$0xff] }
  0x44   :  { %391 = vmatmul.mubr.f32.vlgmr.msra.gmra.mrb[0].mxu0 %v2241_v20  ;;  %v100_v20 = vld [vmem:[%s3553_s3 + $0x250] sm:$0xff]  ;;  %v783_v54 = vld [vmem:[%s3552_s2 + $0x2e8] sm:$0xff]  ;;  %v126_v61 = vld [vmem:[%s3553_s3 + $0x320] sm:$0xff] }
  0x45   :  { %1386 = vmatpush1.bf16.msra.mxu0 %v1385_v21  ;;  %v1393_v44 = vpack.c.bf16 %v100_v20, %v98_v36  ;;  %v1661_v21 = vpack.c.bf16 %v719_v13, %v710_v11  ;;  %v118_v36 = vld [vmem:[%s3553_s3 + $0x2e0] sm:$0xff]  ;;  %v120_v20 = vld [vmem:[%s3553_s3 + $0x2f0] sm:$0xff]  ;;  %461 = vmatprep.mubr.f32.mxu0 %v319_v32  ;;  %v791_v1 = vld [vmem:[%s3552_s2 + $0x328] sm:$0xff] }
  0x46   :  { %1642 = vmatpush1.bf16.msra.mxu1 %v1641_v22  ;;  %1388 = vmatprep.subr.bf16.mxu0 %v1387_v23  ;;  %v1407_v22 = vpack.c.bf16 %v117_v15, %v115_v14  ;;  %v116_v23 = vld [vmem:[%s3553_s3 + $0x2d0] sm:$0xff]  ;;  %v782_v63 = vld [vmem:[%s3552_s2 + $0x2e0] sm:$0xff]  ;;  %v131_v2 = vld [vmem:[%s3553_s3 + $0x348] sm:$0xff] }
  0x47   :  { %1644 = vmatprep.subr.bf16.mxu1 %v1643_v27  ;;  %v119_v27 = vld [vmem:[%s3553_s3 + $0x2e8] sm:$0xff]  ;;  %v792_v55 = vld [vmem:[%s3552_s2 + $0x330] sm:$0xff]  ;;  %v133_v3 = vld [vmem:[%s3553_s3 + $0x358] sm:$0xff] }
  0x48   :  { %v128_v62 = vld [vmem:[%s3553_s3 + $0x330] sm:$0xff]  ;;  %v801_v4 = vld [vmem:[%s3552_s2 + $0x378] sm:$0xff]  ;;  %v810_v5 = vld [vmem:[%s3552_s2 + $0x3c0] sm:$0xff] }
  0x49   :  { %1390 = vmatpush1.bf16.msra.mxu0 %v1389_v33  ;;  %v1409_v33 = vpack.c.bf16 %v116_v23, %v114_v19  ;;  %v130_v9 = vld [vmem:[%s3553_s3 + $0x340] sm:$0xff]  ;;  %v132_v10 = vld [vmem:[%s3553_s3 + $0x350] sm:$0xff]  ;;  %v809_v13 = vld [vmem:[%s3552_s2 + $0x3b8] sm:$0xff] }
  0x4a   :  { %1646 = vmatpush1.bf16.msra.mxu1 %v1645_v34  ;;  %1392 = vmatprep.subr.bf16.mxu0 %v1391_v35  ;;  %v1665_v34 = vpack.c.bf16 %v737_v25, %v728_v24  ;;  %v1411_v35 = vpack.c.bf16 %v121_v28, %v119_v27  ;;  %v800_v11 = vld [vmem:[%s3552_s2 + $0x370] sm:$0xff]  ;;  %v135_v14 = vld [vmem:[%s3553_s3 + $0x368] sm:$0xff]  ;;  %v137_v15 = vld [vmem:[%s3553_s3 + $0x378] sm:$0xff] }
  0x4b   :  { %1648 = vmatprep.subr.bf16.mxu1 %v1647_v38  ;;  %v1667_v38 = vpack.c.bf16 %v756_v31, %v747_v30  ;;  %v819_v16 = vld [vmem:[%s3552_s2 + $0x408] sm:$0xff]  ;;  %v828_v17 = vld [vmem:[%s3552_s2 + $0x450] sm:$0xff]  ;;  %v1681_v19 = vpack.c.bf16 %v809_v13, %v800_v11  ;;  %v818_v24 = vld [vmem:[%s3552_s2 + $0x400] sm:$0xff] }
  0x4c   :  { %v136_v23 = vld [vmem:[%s3553_s3 + $0x370] sm:$0xff]  ;;  %v1683_v25 = vpack.c.bf16 %v828_v17, %v819_v16  ;;  %v139_v27 = vld [vmem:[%s3553_s3 + $0x388] sm:$0xff]  ;;  %v141_v28 = vld [vmem:[%s3553_s3 + $0x398] sm:$0xff] }
  0x4d   :  { %1394 = vmatpush1.bf16.msra.mxu0 %v1393_v44  ;;  %v1413_v44 = vpack.c.bf16 %v120_v20, %v118_v36  ;;  %v837_v30 = vld [vmem:[%s3552_s2 + $0x498] sm:$0xff]  ;;  %v846_v31 = vld [vmem:[%s3552_s2 + $0x4e0] sm:$0xff]  ;;  %v140_v36 = vld [vmem:[%s3553_s3 + $0x390] sm:$0xff] }
  0x4e   :  { %1650 = vmatpush1.bf16.msra.mxu1 %v1649_v45  ;;  %1396 = vmatprep.subr.bf16.mxu0 %v1395_v46  ;;  %v1669_v45 = vpack.c.bf16 %v755_v39, %v746_v37  ;;  %v1415_v46 = vpack.c.bf16 %v125_v41, %v123_v40  ;;  %v836_v20 = vld [vmem:[%s3552_s2 + $0x490] sm:$0xff]  ;;  %v1687_v37 = vpack.c.bf16 %v846_v31, %v837_v30  ;;  %v143_v39 = vld [vmem:[%s3553_s3 + $0x3a8] sm:$0xff]  ;;  %v145_v40 = vld [vmem:[%s3553_s3 + $0x3b8] sm:$0xff] }
  0x4f   :  { %1652 = vmatprep.subr.bf16.mxu1 %v1651_v50  ;;  %v1671_v50 = vpack.c.bf16 %v774_v43, %v765_v42  ;;  %v855_v41 = vld [vmem:[%s3552_s2 + $0x528] sm:$0xff]  ;;  %v864_v42 = vld [vmem:[%s3552_s2 + $0x570] sm:$0xff]  ;;  %v722_v30 = vld [vmem:[%s3552_s2 + $0x100] sm:$0xff] }
  0x50   :  { %v155_v13 = vld [vmem:[%s3553_s3 + $0x408] sm:$0xff]  ;;  %v704_v16 = vld [vmem:[%s3552_s2 + $0x70] sm:$0xff] }
  0x51   :  { %1398 = vmatpush1.bf16.msra.mxu0 %v1397_v57  ;;  %v1417_v57 = vpack.c.bf16 %v124_v48, %v122_v47  ;;  %v144_v47 = vld [vmem:[%s3553_s3 + $0x3b0] sm:$0xff]  ;;  %v854_v48 = vld [vmem:[%s3552_s2 + $0x520] sm:$0xff] }
  0x52   :  { %1654 = vmatpush1.bf16.msra.mxu1 %v1653_v58  ;;  %1400 = vmatprep.subr.bf16.mxu0 %v1399_v60  ;;  %v1673_v58 = vpack.c.bf16 %v773_v51, %v764_v49  ;;  %v1419_v60 = vpack.c.bf16 %v129_v53, %v127_v52  ;;  %v1691_v49 = vpack.c.bf16 %v864_v42, %v855_v41  ;;  %v147_v51 = vld [vmem:[%s3553_s3 + $0x3c8] sm:$0xff]  ;;  %v149_v52 = vld [vmem:[%s3553_s3 + $0x3d8] sm:$0xff]  ;;  %v740_v42 = vld [vmem:[%s3552_s2 + $0x190] sm:$0xff] }
  0x53   :  { %1656 = vmatprep.subr.bf16.mxu1 %v1655_v0  ;;  %v1675_v0 = vpack.c.bf16 %v792_v55, %v783_v54  ;;  %v873_v53 = vld [vmem:[%s3552_s2 + $0x5b8] sm:$0xff]  ;;  %v882_v54 = vld [vmem:[%s3552_s2 + $0x600] sm:$0xff]  ;;  %v731_v41 = vld [vmem:[%s3552_s2 + $0x148] sm:$0xff] }
  0x55   :  { %976 = vmatmul.mubr.f32.vlgmr.msra.gmra.mrb[2].mxu1 %v2314_v56  ;;  %1402 = vmatpush1.bf16.msra.mxu0 %v1401_v6  ;;  %v1421_v6 = vpack.c.bf16 %v128_v62, %v126_v61  ;;  %v148_v61 = vld [vmem:[%s3553_s3 + $0x3d0] sm:$0xff] }
  0x56   :  { %1658 = vmatpush1.bf16.msra.mxu1 %v1657_v7  ;;  %1404 = vmatprep.subr.bf16.mxu0 %v1403_v8  ;;  %v1677_v7 = vpack.c.bf16 %v791_v1, %v782_v63  ;;  %v1423_v8 = vpack.c.bf16 %v133_v3, %v131_v2  ;;  %v872_v62 = vld [vmem:[%s3552_s2 + $0x5b0] sm:$0xff]  ;;  %v1695_v63 = vpack.c.bf16 %v882_v54, %v873_v53  ;;  %v151_v1 = vld [vmem:[%s3553_s3 + $0x3e8] sm:$0xff]  ;;  %v153_v2 = vld [vmem:[%s3553_s3 + $0x3f8] sm:$0xff] }
  0x57   :  { %1660 = vmatprep.subr.bf16.mxu1 %v1659_v12  ;;  %1315 = vmatprep.mubr.msk.f32.mxu1 %vm908_vm0, %v2324_v59  ;;  %v1679_v12 = vpack.c.bf16 %v810_v5, %v801_v4  ;;  %v891_v3 = vld [vmem:[%s3552_s2 + $0x648] sm:$0xff]  ;;  %v900_v4 = vld [vmem:[%s3552_s2 + $0x690] sm:$0xff]  ;;  %v758_v53 = vld [vmem:[%s3552_s2 + $0x220] sm:$0xff] }
  0x58   :  { %v1699_v11 = vpack.c.bf16 %v900_v4, %v891_v3  ;;  %v776_v3 = vld [vmem:[%s3552_s2 + $0x2b0] sm:$0xff] }
  0x59   :  { %1406 = vmatpush1.bf16.msra.mxu0 %v1405_v18  ;;  %v1425_v18 = vpack.c.bf16 %v132_v10, %v130_v9  ;;  %v152_v9 = vld [vmem:[%s3553_s3 + $0x3f0] sm:$0xff]  ;;  %v890_v10 = vld [vmem:[%s3552_s2 + $0x640] sm:$0xff] }
  0x5a   :  { %1662 = vmatpush1.bf16.msra.mxu1 %v1661_v21  ;;  %1408 = vmatprep.subr.bf16.mxu0 %v1407_v22  ;;  %v1427_v21 = vpack.c.bf16 %v137_v15, %v135_v14  ;;  %v134_v22 = vld [vmem:[%s3553_s3 + $0x360] sm:$0xff]  ;;  %v157_v14 = vld [vmem:[%s3553_s3 + $0x418] sm:$0xff]  ;;  %v695_v15 = vld [vmem:[%s3552_s2 + $0x28] sm:$0xff] }
  0x5b   :  { %1664 = vmatprep.subr.bf16.mxu1 %v1663_v26  ;;  %v827_v26 = vld [vmem:[%s3552_s2 + $0x448] sm:$0xff]  ;;  %v1429_v32 = vpack.c.bf16 %v136_v23, %v134_v22  ;;  %v156_v22 = vld [vmem:[%s3553_s3 + $0x410] sm:$0xff]  ;;  %v694_v23 = vld [vmem:[%s3552_s2 + $0x20] sm:$0xff] }
  0x5d   :  { %1410 = vmatpush1.bf16.msra.mxu0 %v1409_v33  ;;  %v1685_v33 = vpack.c.bf16 %v827_v26, %v818_v24  ;;  %v1703_v24 = vpack.c.bf16 %v704_v16, %v695_v15  ;;  %v159_v26 = vld [vmem:[%s3553_s3 + $0x428] sm:$0xff]  ;;  %v794_v15 = vld [vmem:[%s3552_s2 + $0x340] sm:$0xff] }
  0x5e   :  { %1666 = vmatpush1.bf16.msra.mxu1 %v1665_v34  ;;  %1412 = vmatprep.subr.bf16.mxu0 %v1411_v35  ;;  %v1431_v34 = vpack.c.bf16 %v141_v28, %v139_v27  ;;  %v138_v35 = vld [vmem:[%s3553_s3 + $0x380] sm:$0xff]  ;;  %v161_v27 = vld [vmem:[%s3553_s3 + $0x438] sm:$0xff] }
  0x5f   :  { %1668 = vmatprep.subr.bf16.mxu1 %v1667_v38  ;;  %v845_v38 = vld [vmem:[%s3552_s2 + $0x4d8] sm:$0xff]  ;;  %v1433_v43 = vpack.c.bf16 %v140_v36, %v138_v35  ;;  %v160_v35 = vld [vmem:[%s3553_s3 + $0x430] sm:$0xff] }
  0x60   :  { %v713_v28 = vld [vmem:[%s3552_s2 + $0xb8] sm:$0xff]  ;;  %v712_v36 = vld [vmem:[%s3552_s2 + $0xb0] sm:$0xff] }
  0x61   :  { %1414 = vmatpush1.bf16.msra.mxu0 %v1413_v44  ;;  %v1689_v44 = vpack.c.bf16 %v845_v38, %v836_v20  ;;  %v2783_v20 = vld [vmem:[%s3551_s1 + $0x10] sm:$0xff]  ;;  %v721_v38 = vld [vmem:[%s3552_s2 + $0xf8] sm:$0xff] }
  0x62   :  { %1670 = vmatpush1.bf16.msra.mxu1 %v1669_v45  ;;  %1416 = vmatprep.subr.bf16.mxu0 %v1415_v46  ;;  %v1435_v45 = vpack.c.bf16 %v145_v40, %v143_v39  ;;  %v142_v46 = vld [vmem:[%s3553_s3 + $0x3a0] sm:$0xff]  ;;  %v163_v39 = vld [vmem:[%s3553_s3 + $0x448] sm:$0xff]  ;;  %v165_v40 = vld [vmem:[%s3553_s3 + $0x458] sm:$0xff] }
  0x63   :  { %1672 = vmatprep.subr.bf16.mxu1 %v1671_v50  ;;  %v863_v50 = vld [vmem:[%s3552_s2 + $0x568] sm:$0xff]  ;;  %v1437_v55 = vpack.c.bf16 %v144_v47, %v142_v46  ;;  %v1455_v46 = vpack.c.bf16 %v165_v40, %v163_v39  ;;  %v164_v47 = vld [vmem:[%s3553_s3 + $0x450] sm:$0xff]  ;;  %v185_v39 = vld [vmem:[%s3553_s3 + $0x4f8] sm:$0xff] }
  0x64   :  { %v821_v40 = vld [vmem:[%s3552_s2 + $0x418] sm:$0xff] }
  0x65   :  { %1418 = vmatpush1.bf16.msra.mxu0 %v1417_v57  ;;  %v1693_v57 = vpack.c.bf16 %v863_v50, %v854_v48  ;;  %v730_v48 = vld [vmem:[%s3552_s2 + $0x140] sm:$0xff]  ;;  %v167_v50 = vld [vmem:[%s3553_s3 + $0x468] sm:$0xff] }
  0x66   :  { %1674 = vmatpush1.bf16.msra.mxu1 %v1673_v58  ;;  %1420 = vmatprep.subr.bf16.mxu0 %v1419_v60  ;;  %v1439_v58 = vpack.c.bf16 %v149_v52, %v147_v51  ;;  %v146_v60 = vld [vmem:[%s3553_s3 + $0x3c0] sm:$0xff]  ;;  %v169_v51 = vld [vmem:[%s3553_s3 + $0x478] sm:$0xff] }
  0x67   :  { %1676 = vmatprep.subr.bf16.mxu1 %v1675_v0  ;;  %v881_v0 = vld [vmem:[%s3552_s2 + $0x5f8] sm:$0xff]  ;;  %v1441_v5 = vpack.c.bf16 %v148_v61, %v146_v60  ;;  %v168_v60 = vld [vmem:[%s3553_s3 + $0x470] sm:$0xff] }
  0x68   :  { %v749_v52 = vld [vmem:[%s3552_s2 + $0x1d8] sm:$0xff]  ;;  %v748_v61 = vld [vmem:[%s3552_s2 + $0x1d0] sm:$0xff] }
  0x69   :  { %1422 = vmatpush1.bf16.msra.mxu0 %v1421_v6  ;;  %v1697_v6 = vpack.c.bf16 %v881_v0, %v872_v62  ;;  %v1715_v62 = vpack.c.bf16 %v758_v53, %v749_v52  ;;  %v171_v0 = vld [vmem:[%s3553_s3 + $0x488] sm:$0xff] }
  0x6a   :  { %1678 = vmatpush1.bf16.msra.mxu1 %v1677_v7  ;;  %1424 = vmatprep.subr.bf16.mxu0 %v1423_v8  ;;  %v1443_v7 = vpack.c.bf16 %v153_v2, %v151_v1  ;;  %v150_v8 = vld [vmem:[%s3553_s3 + $0x3e0] sm:$0xff]  ;;  %v173_v1 = vld [vmem:[%s3553_s3 + $0x498] sm:$0xff]  ;;  %v767_v2 = vld [vmem:[%s3552_s2 + $0x268] sm:$0xff] }
  0x6b   :  { %1680 = vmatprep.subr.bf16.mxu1 %v1679_v12  ;;  %v899_v12 = vld [vmem:[%s3552_s2 + $0x688] sm:$0xff]  ;;  %v1445_v17 = vpack.c.bf16 %v152_v9, %v150_v8  ;;  %v172_v8 = vld [vmem:[%s3553_s3 + $0x490] sm:$0xff]  ;;  %v766_v9 = vld [vmem:[%s3552_s2 + $0x260] sm:$0xff] }
  0x6d   :  { %1426 = vmatpush1.bf16.msra.mxu0 %v1425_v18  ;;  %v1701_v18 = vpack.c.bf16 %v899_v12, %v890_v10  ;;  %v1719_v10 = vpack.c.bf16 %v776_v3, %v767_v2  ;;  %v175_v12 = vld [vmem:[%s3553_s3 + $0x4a8] sm:$0xff] }
  0x6e   :  { %1682 = vmatpush1.bf16.msra.mxu1 %v1681_v19  ;;  %1428 = vmatprep.subr.bf16.mxu0 %v1427_v21  ;;  %v1447_v19 = vpack.c.bf16 %v157_v14, %v155_v13  ;;  %v154_v21 = vld [vmem:[%s3553_s3 + $0x400] sm:$0xff]  ;;  %v177_v13 = vld [vmem:[%s3553_s3 + $0x4b8] sm:$0xff] }
  0x6f   :  { %1684 = vmatprep.subr.bf16.mxu1 %v1683_v25  ;;  %v703_v25 = vld [vmem:[%s3552_s2 + $0x68] sm:$0xff]  ;;  %v1449_v31 = vpack.c.bf16 %v156_v22, %v154_v21  ;;  %v785_v14 = vld [vmem:[%s3552_s2 + $0x2f8] sm:$0xff]  ;;  %v176_v21 = vld [vmem:[%s3553_s3 + $0x4b0] sm:$0xff] }
  0x70   :  { %v784_v22 = vld [vmem:[%s3552_s2 + $0x2f0] sm:$0xff] }
  0x71   :  { %1430 = vmatpush1.bf16.msra.mxu0 %v1429_v32  ;;  %v158_v32 = vld [vmem:[%s3553_s3 + $0x420] sm:$0xff] }
  0x72   :  { %1686 = vmatpush1.bf16.msra.mxu1 %v1685_v33  ;;  %1432 = vmatprep.subr.bf16.mxu0 %v1431_v34  ;;  %v1705_v33 = vpack.c.bf16 %v703_v25, %v694_v23  ;;  %v1451_v34 = vpack.c.bf16 %v161_v27, %v159_v26  ;;  %v1723_v23 = vpack.c.bf16 %v794_v15, %v785_v14  ;;  %v179_v25 = vld [vmem:[%s3553_s3 + $0x4c8] sm:$0xff]  ;;  %v181_v26 = vld [vmem:[%s3553_s3 + $0x4d8] sm:$0xff] }
  0x73   :  { %1688 = vmatprep.subr.bf16.mxu1 %v1687_v37  ;;  %v1707_v37 = vpack.c.bf16 %v722_v30, %v713_v28  ;;  %v803_v27 = vld [vmem:[%s3552_s2 + $0x388] sm:$0xff]  ;;  %v812_v28 = vld [vmem:[%s3552_s2 + $0x3d0] sm:$0xff] }
  0x75   :  { %1434 = vmatpush1.bf16.msra.mxu0 %v1433_v43  ;;  %v320_v43 = vcombine.high %v2783_v20, %v2783_v20 }
  0x76   :  { %1690 = vmatpush1.bf16.msra.mxu1 %v1689_v44  ;;  %1436 = vmatprep.subr.bf16.mxu0 %v1435_v45  ;;  %v1453_v44 = vpack.c.bf16 %v160_v35, %v158_v32  ;;  %v1709_v45 = vpack.c.bf16 %v721_v38, %v712_v36  ;;  %v1471_v32 = vpack.c.bf16 %v181_v26, %v179_v25  ;;  %v802_v35 = vld [vmem:[%s3552_s2 + $0x380] sm:$0xff]  ;;  %v183_v38 = vld [vmem:[%s3553_s3 + $0x4e8] sm:$0xff]  ;;  %v893_v25 = vld [vmem:[%s3552_s2 + $0x658] sm:$0xff] }
  0x77   :  { %1692 = vmatprep.subr.bf16.mxu1 %v1691_v49  ;;  %v739_v49 = vld [vmem:[%s3552_s2 + $0x188] sm:$0xff]  ;;  %v1727_v36 = vpack.c.bf16 %v812_v28, %v803_v27  ;;  %v902_v26 = vld [vmem:[%s3552_s2 + $0x6a0] sm:$0xff] }
  0x78   :  { %v198_v28 = vld [vmem:[%s3553_s3 + $0x560] sm:$0xff] }
  0x79   :  { %1438 = vmatpush1.bf16.msra.mxu0 %v1437_v55  ;;  %v1713_v55 = vpack.c.bf16 %v739_v49, %v730_v48  ;;  %v829_v48 = vld [vmem:[%s3552_s2 + $0x458] sm:$0xff] }
  0x7a   :  { %1694 = vmatpush1.bf16.msra.mxu1 %v1693_v57  ;;  %1440 = vmatprep.subr.bf16.mxu0 %v1439_v58  ;;  %v1459_v57 = vpack.c.bf16 %v169_v51, %v167_v50  ;;  %v166_v58 = vld [vmem:[%s3553_s3 + $0x460] sm:$0xff]  ;;  %v189_v49 = vld [vmem:[%s3553_s3 + $0x518] sm:$0xff]  ;;  %v839_v50 = vld [vmem:[%s3552_s2 + $0x4a8] sm:$0xff] }
  0x7b   :  { %1696 = vmatprep.subr.bf16.mxu1 %v1695_v63  ;;  %v757_v63 = vld [vmem:[%s3552_s2 + $0x218] sm:$0xff]  ;;  %v1461_v4 = vpack.c.bf16 %v168_v60, %v166_v58  ;;  %v848_v51 = vld [vmem:[%s3552_s2 + $0x4f0] sm:$0xff]  ;;  %v838_v58 = vld [vmem:[%s3552_s2 + $0x4a0] sm:$0xff] }
  0x7c   :  { %v1735_v60 = vpack.c.bf16 %v848_v51, %v839_v50 }
  0x7d   :  { %1442 = vmatpush1.bf16.msra.mxu0 %v1441_v5  ;;  %v1717_v5 = vpack.c.bf16 %v757_v63, %v748_v61  ;;  %v847_v61 = vld [vmem:[%s3552_s2 + $0x4e8] sm:$0xff]  ;;  %v193_v63 = vld [vmem:[%s3553_s3 + $0x538] sm:$0xff] }
  0x7e   :  { %1698 = vmatpush1.bf16.msra.mxu1 %v1697_v6  ;;  %1444 = vmatprep.subr.bf16.mxu0 %v1443_v7  ;;  %v1463_v6 = vpack.c.bf16 %v173_v1, %v171_v0  ;;  %v170_v7 = vld [vmem:[%s3553_s3 + $0x480] sm:$0xff]  ;;  %v857_v0 = vld [vmem:[%s3552_s2 + $0x538] sm:$0xff]  ;;  %v1737_v3 = vpack.c.bf16 %v847_v61, %v838_v58 }
  0x7f   :  { %1700 = vmatprep.subr.bf16.mxu1 %v1699_v11  ;;  %v775_v11 = vld [vmem:[%s3552_s2 + $0x2a8] sm:$0xff]  ;;  %v1465_v16 = vpack.c.bf16 %v172_v8, %v170_v7  ;;  %v866_v1 = vld [vmem:[%s3552_s2 + $0x580] sm:$0xff]  ;;  %v856_v7 = vld [vmem:[%s3552_s2 + $0x530] sm:$0xff] }
  0x80   :  { %v1739_v8 = vpack.c.bf16 %v866_v1, %v857_v0 }
  0x81   :  { %1446 = vmatpush1.bf16.msra.mxu0 %v1445_v17  ;;  %v1721_v17 = vpack.c.bf16 %v775_v11, %v766_v9  ;;  %v865_v9 = vld [vmem:[%s3552_s2 + $0x578] sm:$0xff] }
  0x82   :  { %1702 = vmatpush1.bf16.msra.mxu1 %v1701_v18  ;;  %1448 = vmatprep.subr.bf16.mxu0 %v1447_v19  ;;  %v1467_v18 = vpack.c.bf16 %v177_v13, %v175_v12  ;;  %v174_v19 = vld [vmem:[%s3553_s3 + $0x4a0] sm:$0xff]  ;;  %v197_v11 = vld [vmem:[%s3553_s3 + $0x558] sm:$0xff]  ;;  %v875_v12 = vld [vmem:[%s3552_s2 + $0x5c8] sm:$0xff]  ;;  %v1741_v15 = vpack.c.bf16 %v865_v9, %v856_v7 }
  0x83   :  { %1704 = vmatprep.subr.bf16.mxu1 %v1703_v24  ;;  %v793_v24 = vld [vmem:[%s3552_s2 + $0x338] sm:$0xff]  ;;  %v1469_v30 = vpack.c.bf16 %v176_v21, %v174_v19  ;;  %v884_v13 = vld [vmem:[%s3552_s2 + $0x610] sm:$0xff]  ;;  %v874_v19 = vld [vmem:[%s3552_s2 + $0x5c0] sm:$0xff] }
  0x84   :  { %462 = vmatmul.mubr.f32.vlgmr.msra.gmra.mrb[0].mxu0 %v2521_v29  ;;  %v162_v29 = vld [vmem:[%s3553_s3 + $0x440] sm:$0xff]  ;;  %v1743_v21 = vpack.c.bf16 %v884_v13, %v875_v12 }
  0x85   :  { %1047 = vmatmul.mubr.f32.vlgmr.msra.gmra.mrb[4].mxu1 %v2314_v56  ;;  %1450 = vmatpush1.bf16.msra.mxu0 %v1449_v31  ;;  %v1711_v56 = vpack.c.bf16 %v740_v42, %v731_v41  ;;  %v1457_v54 = vpack.c.bf16 %v164_v47, %v162_v29  ;;  %v1725_v31 = vpack.c.bf16 %v793_v24, %v784_v22  ;;  %v830_v41 = vld [vmem:[%s3552_s2 + $0x460] sm:$0xff]  ;;  %v820_v29 = vld [vmem:[%s3552_s2 + $0x410] sm:$0xff]  ;;  %v883_v22 = vld [vmem:[%s3552_s2 + $0x608] sm:$0xff] }
  0x86   :  { %1706 = vmatpush1.bf16.msra.mxu1 %v1705_v33  ;;  %1452 = vmatprep.subr.bf16.mxu0 %v1451_v34  ;;  %v178_v33 = vld [vmem:[%s3553_s3 + $0x4c0] sm:$0xff]  ;;  %v180_v34 = vld [vmem:[%s3553_s3 + $0x4d0] sm:$0xff]  ;;  %v1731_v47 = vpack.c.bf16 %v830_v41, %v821_v40  ;;  %v1733_v53 = vpack.c.bf16 %v829_v48, %v820_v29  ;;  %v201_v24 = vld [vmem:[%s3553_s3 + $0x578] sm:$0xff] }
  0x87   :  { %1708 = vmatprep.subr.bf16.mxu1 %v1707_v37  ;;  %1316 = vmatprep.mubr.msk.f32.mxu1 %vm908_vm0, %v2324_v59  ;;  %v811_v37 = vld [vmem:[%s3552_s2 + $0x3c8] sm:$0xff]  ;;  %v1473_v42 = vpack.c.bf16 %v180_v34, %v178_v33  ;;  %v892_v33 = vld [vmem:[%s3552_s2 + $0x650] sm:$0xff]  ;;  %v901_v34 = vld [vmem:[%s3552_s2 + $0x698] sm:$0xff] }
  0x88   :  { %532 = vmatprep.mubr.f32.mxu0 %v320_v43  ;;  %v1729_v43 = vpack.c.bf16 %v811_v37, %v802_v35  ;;  %v1747_v35 = vpack.c.bf16 %v902_v26, %v893_v25  ;;  %v205_v37 = vld [vmem:[%s3553_s3 + $0x598] sm:$0xff] }
  0x89   :  { %1454 = vmatpush1.bf16.msra.mxu0 %v1453_v44  ;;  %v1475_v44 = vpack.c.bf16 %v185_v39, %v183_v38 }
  0x8a   :  { %1710 = vmatpush1.bf16.msra.mxu1 %v1709_v45  ;;  %1456 = vmatprep.subr.bf16.mxu0 %v1455_v46  ;;  %v182_v45 = vld [vmem:[%s3553_s3 + $0x4e0] sm:$0xff]  ;;  %v184_v46 = vld [vmem:[%s3553_s3 + $0x4f0] sm:$0xff] }
  0x8b   :  { %1712 = vmatprep.subr.bf16.mxu1 %v1711_v56  ;;  %v187_v56 = vld [vmem:[%s3553_s3 + $0x508] sm:$0xff]  ;;  %v1477_v52 = vpack.c.bf16 %v184_v46, %v182_v45 }
  0x8d   :  { %1458 = vmatpush1.bf16.msra.mxu0 %v1457_v54  ;;  %v1479_v54 = vpack.c.bf16 %v189_v49, %v187_v56 }
  0x8e   :  { %1714 = vmatpush1.bf16.msra.mxu1 %v1713_v55  ;;  %1460 = vmatprep.subr.bf16.mxu0 %v1459_v57  ;;  %v186_v55 = vld [vmem:[%s3553_s3 + $0x500] sm:$0xff]  ;;  %v188_v57 = vld [vmem:[%s3553_s3 + $0x510] sm:$0xff] }
  0x8f   :  { %1716 = vmatprep.subr.bf16.mxu1 %v1715_v62  ;;  %v191_v62 = vld [vmem:[%s3553_s3 + $0x528] sm:$0xff]  ;;  %v1481_v2 = vpack.c.bf16 %v188_v57, %v186_v55 }
  0x91   :  { %1462 = vmatpush1.bf16.msra.mxu0 %v1461_v4  ;;  %v1483_v4 = vpack.c.bf16 %v193_v63, %v191_v62 }
  0x92   :  { %1718 = vmatpush1.bf16.msra.mxu1 %v1717_v5  ;;  %1464 = vmatprep.subr.bf16.mxu0 %v1463_v6  ;;  %v190_v5 = vld [vmem:[%s3553_s3 + $0x520] sm:$0xff]  ;;  %v192_v6 = vld [vmem:[%s3553_s3 + $0x530] sm:$0xff] }
  0x93   :  { %1720 = vmatprep.subr.bf16.mxu1 %v1719_v10  ;;  %v195_v10 = vld [vmem:[%s3553_s3 + $0x548] sm:$0xff]  ;;  %v1485_v14 = vpack.c.bf16 %v192_v6, %v190_v5 }
  0x95   :  { %1466 = vmatpush1.bf16.msra.mxu0 %v1465_v16  ;;  %v1487_v16 = vpack.c.bf16 %v197_v11, %v195_v10 }
  0x96   :  { %1722 = vmatpush1.bf16.msra.mxu1 %v1721_v17  ;;  %1468 = vmatprep.subr.bf16.mxu0 %v1467_v18  ;;  %v194_v17 = vld [vmem:[%s3553_s3 + $0x540] sm:$0xff]  ;;  %v196_v18 = vld [vmem:[%s3553_s3 + $0x550] sm:$0xff] }
  0x97   :  { %1724 = vmatprep.subr.bf16.mxu1 %v1723_v23  ;;  %v199_v23 = vld [vmem:[%s3553_s3 + $0x568] sm:$0xff]  ;;  %v1489_v27 = vpack.c.bf16 %v196_v18, %v194_v17 }
  0x99   :  { %1470 = vmatpush1.bf16.msra.mxu0 %v1469_v30  ;;  %v1745_v30 = vpack.c.bf16 %v883_v22, %v874_v19 }
  0x9a   :  { %1726 = vmatpush1.bf16.msra.mxu1 %v1725_v31  ;;  %1472 = vmatprep.subr.bf16.mxu0 %v1471_v32  ;;  %v1491_v31 = vpack.c.bf16 %v201_v24, %v199_v23  ;;  %v200_v32 = vld [vmem:[%s3553_s3 + $0x570] sm:$0xff] }
  0x9b   :  { %1728 = vmatprep.subr.bf16.mxu1 %v1727_v36  ;;  %v203_v36 = vld [vmem:[%s3553_s3 + $0x588] sm:$0xff] }
  0x9d   :  { %1474 = vmatpush1.bf16.msra.mxu0 %v1473_v42 }
  0x9e   :  { %1730 = vmatpush1.bf16.msra.mxu1 %v1729_v43  ;;  %1476 = vmatprep.subr.bf16.mxu0 %v1475_v44 }
  0x9f   :  { %1732 = vmatprep.subr.bf16.mxu1 %v1731_v47 }
  0xa1   :  { %1478 = vmatpush1.bf16.msra.mxu0 %v1477_v52 }
  0xa2   :  { %1734 = vmatpush1.bf16.msra.mxu1 %v1733_v53  ;;  %1480 = vmatprep.subr.bf16.mxu0 %v1479_v54 }
  0xa3   :  { %1736 = vmatprep.subr.bf16.mxu1 %v1735_v60 }
  0xa5   :  { %1482 = vmatpush1.bf16.msra.mxu0 %v1481_v2 }
  0xa6   :  { %1738 = vmatpush1.bf16.msra.mxu1 %v1737_v3  ;;  %1484 = vmatprep.subr.bf16.mxu0 %v1483_v4 }
  0xa7   :  { %1740 = vmatprep.subr.bf16.mxu1 %v1739_v8 }
  0xa9   :  { %1486 = vmatpush1.bf16.msra.mxu0 %v1485_v14 }
  0xaa   :  { %1742 = vmatpush1.bf16.msra.mxu1 %v1741_v15  ;;  %1488 = vmatprep.subr.bf16.mxu0 %v1487_v16 }
  0xab   :  { %1744 = vmatprep.subr.bf16.mxu1 %v1743_v21 }
  0xac   :  { %12 = vsyncpa [#allocation5], 0  ;;  %v697_v38 = vld [vmem:[%s3552_s2 + $0x38] sm:$0xff]  ;;  %v706_v39 = vld [vmem:[%s3552_s2 + $0x80] sm:$0xff]  ;;  %v1493_v40 = vpack.c.bf16 %v200_v32, %v198_v28  ;;  %v1749_v41 = vpack.c.bf16 %v901_v34, %v892_v33  ;;  %v1495_v42 = vpack.c.bf16 %v205_v37, %v203_v36  ;;  %vm685_vm1 = vcmask 1043456  }
  0xad   :  { %1490 = vmatpush1.bf16.msra.mxu0 %v1489_v27  ;;  %v202_v43 = vld [vmem:[%s3553_s3 + $0x580] sm:$0xff]  ;;  %v204_v44 = vld [vmem:[%s3553_s3 + $0x590] sm:$0xff]  ;;  %v1751_v46 = vpack.c.bf16 %v706_v39, %v697_v38  ;;  %v705_v29 = vld [vmem:[%s3552_s2 + $0x78] sm:$0xff]  ;;  %vm686_vm2 = vcmask 523268  }
  0xae   :  { %1746 = vmatpush1.bf16.msra.mxu1 %v1745_v30  ;;  %1492 = vmatprep.subr.bf16.mxu0 %v1491_v31  ;;  %v696_v45 = vld [vmem:[%s3552_s2 + $0x30] sm:$0xff]  ;;  %v207_v47 = vld [vmem:[%s3553_s3 + $0x5a8] sm:$0xff]  ;;  %v209_v48 = vld [vmem:[%s3553_s3 + $0x5b8] sm:$0xff]  ;;  %v1497_v50 = vpack.c.bf16 %v204_v44, %v202_v43 }
  0xaf   :  { %1748 = vmatprep.subr.bf16.mxu1 %v1747_v35  ;;  %v715_v56 = vld [vmem:[%s3552_s2 + $0xc8] sm:$0xff]  ;;  %v724_v49 = vld [vmem:[%s3552_s2 + $0x110] sm:$0xff]  ;;  %v1753_v51 = vpack.c.bf16 %v705_v29, %v696_v45  ;;  %v1499_v52 = vpack.c.bf16 %v209_v48, %v207_v47  ;;  %v206_v53 = vld [vmem:[%s3553_s3 + $0x5a0] sm:$0xff] }
  0xb0   :  { %v208_v54 = vld [vmem:[%s3553_s3 + $0x5b0] sm:$0xff]  ;;  %v714_v55 = vld [vmem:[%s3552_s2 + $0xc0] sm:$0xff]  ;;  %v1755_v57 = vpack.c.bf16 %v724_v49, %v715_v56  ;;  %v723_v58 = vld [vmem:[%s3552_s2 + $0x108] sm:$0xff] }
  0xb1   :  { %1494 = vmatpush1.bf16.msra.mxu0 %v1493_v40  ;;  %v211_v60 = vld [vmem:[%s3553_s3 + $0x5c8] sm:$0xff]  ;;  %v213_v61 = vld [vmem:[%s3553_s3 + $0x5d8] sm:$0xff]  ;;  %v742_v63 = vld [vmem:[%s3552_s2 + $0x1a0] sm:$0xff]  ;;  %v1501_v1 = vpack.c.bf16 %v208_v54, %v206_v53  ;;  %v1757_v2 = vpack.c.bf16 %v723_v58, %v714_v55 }
  0xb2   :  { %1750 = vmatpush1.bf16.msra.mxu1 %v1749_v41  ;;  %1496 = vmatprep.subr.bf16.mxu0 %v1495_v42  ;;  %v733_v62 = vld [vmem:[%s3552_s2 + $0x158] sm:$0xff]  ;;  %v3097_v0 = vld [vmem:[%s3550_s0] sm:$0xff]  ;;  %v1503_v3 = vpack.c.bf16 %v213_v61, %v211_v60  ;;  %v212_v5 = vld [vmem:[%s3553_s3 + $0x5d0] sm:$0xff] }
  0xb3   :  { %1752 = vmatprep.subr.bf16.mxu1 %v1751_v46  ;;  %v210_v4 = vld [vmem:[%s3553_s3 + $0x5c0] sm:$0xff]  ;;  %v732_v6 = vld [vmem:[%s3552_s2 + $0x150] sm:$0xff]  ;;  %v1759_v7 = vpack.c.bf16 %v742_v63, %v733_v62  ;;  %v741_v8 = vld [vmem:[%s3552_s2 + $0x198] sm:$0xff] }
  0xb4   :  { %v215_v9 = vld [vmem:[%s3553_s3 + $0x5e8] sm:$0xff]  ;;  %v217_v10 = vld [vmem:[%s3553_s3 + $0x5f8] sm:$0xff]  ;;  %v760_v12 = vld [vmem:[%s3552_s2 + $0x230] sm:$0xff]  ;;  %v1505_v13 = vpack.c.bf16 %v212_v5, %v210_v4  ;;  %v1761_v14 = vpack.c.bf16 %v741_v8, %v732_v6 }
  0xb5   :  { %1118 = vmatmul.mubr.f32.vlgmr.msra.gmra.mrb[6].mxu1 %v3097_v0  ;;  %1498 = vmatpush1.bf16.msra.mxu0 %v1497_v50  ;;  %v751_v11 = vld [vmem:[%s3552_s2 + $0x1e8] sm:$0xff]  ;;  %v1507_v15 = vpack.c.bf16 %v217_v10, %v215_v9  ;;  %v214_v16 = vld [vmem:[%s3553_s3 + $0x5e0] sm:$0xff]  ;;  %v216_v17 = vld [vmem:[%s3553_s3 + $0x5f0] sm:$0xff] }
  0xb6   :  { %1754 = vmatpush1.bf16.msra.mxu1 %v1753_v51  ;;  %1500 = vmatprep.subr.bf16.mxu0 %v1499_v52  ;;  %v750_v18 = vld [vmem:[%s3552_s2 + $0x1e0] sm:$0xff]  ;;  %v1763_v19 = vpack.c.bf16 %v760_v12, %v751_v11  ;;  %v759_v21 = vld [vmem:[%s3552_s2 + $0x228] sm:$0xff]  ;;  %v221_v23 = vld [vmem:[%s3553_s3 + $0x618] sm:$0xff]  ;;  %v1509_v26 = vpack.c.bf16 %v216_v17, %v214_v16 }
  0xb7   :  { %1756 = vmatprep.subr.bf16.mxu1 %v1755_v57  ;;  %1317 = vmatprep.mubr.msk.f32.mxu1 %vm908_vm0, %v2324_v59  ;;  %v219_v22 = vld [vmem:[%s3553_s3 + $0x608] sm:$0xff]  ;;  %v769_v24 = vld [vmem:[%s3552_s2 + $0x278] sm:$0xff]  ;;  %v778_v25 = vld [vmem:[%s3552_s2 + $0x2c0] sm:$0xff]  ;;  %v1765_v28 = vpack.c.bf16 %v759_v21, %v750_v18 }
  0xb8   :  { %v218_v27 = vld [vmem:[%s3553_s3 + $0x600] sm:$0xff]  ;;  %v1511_v30 = vpack.c.bf16 %v221_v23, %v219_v22  ;;  %v220_v31 = vld [vmem:[%s3553_s3 + $0x610] sm:$0xff]  ;;  %v3162_v33 = vld [vmem:[%s3551_s1 + $0x18] sm:$0xff]  ;;  %v1767_v34 = vpack.c.bf16 %v778_v25, %v769_v24 }
  0xb9   :  { %1502 = vmatpush1.bf16.msra.mxu0 %v1501_v1  ;;  %v768_v32 = vld [vmem:[%s3552_s2 + $0x270] sm:$0xff]  ;;  %v777_v35 = vld [vmem:[%s3552_s2 + $0x2b8] sm:$0xff]  ;;  %v223_v36 = vld [vmem:[%s3553_s3 + $0x628] sm:$0xff]  ;;  %v1513_v40 = vpack.c.bf16 %v220_v31, %v218_v27  ;;  %v321_v41 = vcombine.high %v3162_v33, %v3162_v33 }
  0xba   :  { %1758 = vmatpush1.bf16.msra.mxu1 %v1757_v2  ;;  %1504 = vmatprep.subr.bf16.mxu0 %v1503_v3  ;;  %v225_v37 = vld [vmem:[%s3553_s3 + $0x638] sm:$0xff]  ;;  %v787_v38 = vld [vmem:[%s3552_s2 + $0x308] sm:$0xff]  ;;  %v796_v39 = vld [vmem:[%s3552_s2 + $0x350] sm:$0xff]  ;;  %v1769_v42 = vpack.c.bf16 %v777_v35, %v768_v32 }
  0xbb   :  { %1760 = vmatprep.subr.bf16.mxu1 %v1759_v7  ;;  %v1515_v43 = vpack.c.bf16 %v225_v37, %v223_v36  ;;  %v222_v44 = vld [vmem:[%s3553_s3 + $0x620] sm:$0xff]  ;;  %v224_v45 = vld [vmem:[%s3553_s3 + $0x630] sm:$0xff]  ;;  %v1771_v29 = vpack.c.bf16 %v796_v39, %v787_v38  ;;  %v795_v47 = vld [vmem:[%s3552_s2 + $0x348] sm:$0xff] }
  0xbc   :  { %v786_v46 = vld [vmem:[%s3552_s2 + $0x300] sm:$0xff]  ;;  %v227_v48 = vld [vmem:[%s3553_s3 + $0x648] sm:$0xff]  ;;  %v229_v56 = vld [vmem:[%s3553_s3 + $0x658] sm:$0xff]  ;;  %v1517_v51 = vpack.c.bf16 %v224_v45, %v222_v44 }
  0xbd   :  { %1506 = vmatpush1.bf16.msra.mxu0 %v1505_v13  ;;  %v805_v49 = vld [vmem:[%s3552_s2 + $0x398] sm:$0xff]  ;;  %v814_v50 = vld [vmem:[%s3552_s2 + $0x3e0] sm:$0xff]  ;;  %v1773_v52 = vpack.c.bf16 %v795_v47, %v786_v46  ;;  %v1519_v53 = vpack.c.bf16 %v229_v56, %v227_v48  ;;  %v804_v55 = vld [vmem:[%s3552_s2 + $0x390] sm:$0xff] }
  0xbe   :  { %1762 = vmatpush1.bf16.msra.mxu1 %v1761_v14  ;;  %1508 = vmatprep.subr.bf16.mxu0 %v1507_v15  ;;  %v226_v54 = vld [vmem:[%s3553_s3 + $0x640] sm:$0xff]  ;;  %v1775_v57 = vpack.c.bf16 %v814_v50, %v805_v49  ;;  %v813_v58 = vld [vmem:[%s3552_s2 + $0x3d8] sm:$0xff]  ;;  %v231_v60 = vld [vmem:[%s3553_s3 + $0x668] sm:$0xff] }
  0xbf   :  { %1764 = vmatprep.subr.bf16.mxu1 %v1763_v19  ;;  %v233_v61 = vld [vmem:[%s3553_s3 + $0x678] sm:$0xff]  ;;  %v823_v62 = vld [vmem:[%s3552_s2 + $0x428] sm:$0xff]  ;;  %v832_v63 = vld [vmem:[%s3552_s2 + $0x470] sm:$0xff]  ;;  %v1777_v2 = vpack.c.bf16 %v813_v58, %v804_v55 }
  0xc0   :  { %v1523_v3 = vpack.c.bf16 %v233_v61, %v231_v60  ;;  %v230_v4 = vld [vmem:[%s3553_s3 + $0x660] sm:$0xff]  ;;  %v232_v5 = vld [vmem:[%s3553_s3 + $0x670] sm:$0xff]  ;;  %v1779_v7 = vpack.c.bf16 %v832_v63, %v823_v62  ;;  %v831_v8 = vld [vmem:[%s3552_s2 + $0x468] sm:$0xff] }
  0xc1   :  { %1510 = vmatpush1.bf16.msra.mxu0 %v1509_v26  ;;  %v822_v6 = vld [vmem:[%s3552_s2 + $0x420] sm:$0xff]  ;;  %v235_v9 = vld [vmem:[%s3553_s3 + $0x688] sm:$0xff]  ;;  %v237_v10 = vld [vmem:[%s3553_s3 + $0x698] sm:$0xff]  ;;  %v1525_v13 = vpack.c.bf16 %v232_v5, %v230_v4 }
  0xc2   :  { %1766 = vmatpush1.bf16.msra.mxu1 %v1765_v28  ;;  %1512 = vmatprep.subr.bf16.mxu0 %v1511_v30  ;;  %v841_v11 = vld [vmem:[%s3552_s2 + $0x4b8] sm:$0xff]  ;;  %v850_v12 = vld [vmem:[%s3552_s2 + $0x500] sm:$0xff]  ;;  %v1781_v14 = vpack.c.bf16 %v831_v8, %v822_v6  ;;  %v1527_v15 = vpack.c.bf16 %v237_v10, %v235_v9  ;;  %v236_v17 = vld [vmem:[%s3553_s3 + $0x690] sm:$0xff] }
  0xc3   :  { %1768 = vmatprep.subr.bf16.mxu1 %v1767_v34  ;;  %v234_v16 = vld [vmem:[%s3553_s3 + $0x680] sm:$0xff]  ;;  %v840_v18 = vld [vmem:[%s3552_s2 + $0x4b0] sm:$0xff]  ;;  %v1783_v19 = vpack.c.bf16 %v850_v12, %v841_v11  ;;  %v849_v21 = vld [vmem:[%s3552_s2 + $0x4f8] sm:$0xff] }
  0xc4   :  { %533 = vmatmul.mubr.f32.vlgmr.msra.gmra.mrb[0].mxu0 %v2783_v20  ;;  %v228_v20 = vld [vmem:[%s3553_s3 + $0x650] sm:$0xff]  ;;  %v239_v22 = vld [vmem:[%s3553_s3 + $0x6a8] sm:$0xff]  ;;  %v241_v23 = vld [vmem:[%s3553_s3 + $0x6b8] sm:$0xff]  ;;  %v1529_v26 = vpack.c.bf16 %v236_v17, %v234_v16  ;;  %v1785_v27 = vpack.c.bf16 %v849_v21, %v840_v18 }
  0xc5   :  { %1514 = vmatpush1.bf16.msra.mxu0 %v1513_v40  ;;  %603 = vmatprep.mubr.f32.mxu0 %v321_v41  ;;  %v1521_v1 = vpack.c.bf16 %v228_v20, %v226_v54  ;;  %v859_v24 = vld [vmem:[%s3552_s2 + $0x548] sm:$0xff]  ;;  %v868_v25 = vld [vmem:[%s3552_s2 + $0x590] sm:$0xff]  ;;  %v1531_v28 = vpack.c.bf16 %v241_v23, %v239_v22  ;;  %v238_v30 = vld [vmem:[%s3553_s3 + $0x6a0] sm:$0xff] }
  0xc6   :  { %1770 = vmatpush1.bf16.msra.mxu1 %v1769_v42  ;;  %1516 = vmatprep.subr.bf16.mxu0 %v1515_v43  ;;  %v240_v31 = vld [vmem:[%s3553_s3 + $0x6b0] sm:$0xff]  ;;  %v858_v32 = vld [vmem:[%s3552_s2 + $0x540] sm:$0xff]  ;;  %v1787_v34 = vpack.c.bf16 %v868_v25, %v859_v24  ;;  %v867_v35 = vld [vmem:[%s3552_s2 + $0x588] sm:$0xff] }
  0xc7   :  { %1772 = vmatprep.subr.bf16.mxu1 %v1771_v29  ;;  %v243_v36 = vld [vmem:[%s3553_s3 + $0x6c8] sm:$0xff]  ;;  %v245_v37 = vld [vmem:[%s3553_s3 + $0x6d8] sm:$0xff]  ;;  %v886_v39 = vld [vmem:[%s3552_s2 + $0x620] sm:$0xff]  ;;  %v1533_v40 = vpack.c.bf16 %v240_v31, %v238_v30  ;;  %v1789_v41 = vpack.c.bf16 %v867_v35, %v858_v32 }
  0xc8   :  { %v877_v38 = vld [vmem:[%s3552_s2 + $0x5d8] sm:$0xff]  ;;  %v1535_v42 = vpack.c.bf16 %v245_v37, %v243_v36  ;;  %v242_v43 = vld [vmem:[%s3553_s3 + $0x6c0] sm:$0xff]  ;;  %v244_v44 = vld [vmem:[%s3553_s3 + $0x6d0] sm:$0xff] }
  0xc9   :  { %1518 = vmatpush1.bf16.msra.mxu0 %v1517_v51  ;;  %v876_v45 = vld [vmem:[%s3552_s2 + $0x5d0] sm:$0xff]  ;;  %v1791_v46 = vpack.c.bf16 %v886_v39, %v877_v38  ;;  %v885_v29 = vld [vmem:[%s3552_s2 + $0x618] sm:$0xff]  ;;  %v247_v47 = vld [vmem:[%s3553_s3 + $0x6e8] sm:$0xff]  ;;  %v1537_v50 = vpack.c.bf16 %v244_v44, %v242_v43 }
  0xca   :  { %1774 = vmatpush1.bf16.msra.mxu1 %v1773_v52  ;;  %1520 = vmatprep.subr.bf16.mxu0 %v1519_v53  ;;  %v249_v48 = vld [vmem:[%s3553_s3 + $0x6f8] sm:$0xff]  ;;  %v895_v56 = vld [vmem:[%s3552_s2 + $0x668] sm:$0xff]  ;;  %v904_v49 = vld [vmem:[%s3552_s2 + $0x6b0] sm:$0xff]  ;;  %v1793_v51 = vpack.c.bf16 %v885_v29, %v876_v45 }
  0xcb   :  { %1776 = vmatprep.subr.bf16.mxu1 %v1775_v57  ;;  %v1539_v52 = vpack.c.bf16 %v249_v48, %v247_v47  ;;  %v246_v53 = vld [vmem:[%s3553_s3 + $0x6e0] sm:$0xff]  ;;  %v248_v54 = vld [vmem:[%s3553_s3 + $0x6f0] sm:$0xff]  ;;  %v1795_v55 = vpack.c.bf16 %v904_v49, %v895_v56  ;;  %v903_v57 = vld [vmem:[%s3552_s2 + $0x6a8] sm:$0xff] }
  0xcc   :  { %v894_v20 = vld [vmem:[%s3552_s2 + $0x660] sm:$0xff]  ;;  %v251_v58 = vld [vmem:[%s3553_s3 + $0x708] sm:$0xff]  ;;  %v253_v60 = vld [vmem:[%s3553_s3 + $0x718] sm:$0xff]  ;;  %v1541_v61 = vpack.c.bf16 %v248_v54, %v246_v53 }
  0xcd   :  { %1522 = vmatpush1.bf16.msra.mxu0 %v1521_v1  ;;  %v1797_v62 = vpack.c.bf16 %v903_v57, %v894_v20  ;;  %v1543_v63 = vpack.c.bf16 %v253_v60, %v251_v58  ;;  %v250_v1 = vld [vmem:[%s3553_s3 + $0x700] sm:$0xff]  ;;  %v707_v4 = vld [vmem:[%s3552_s2 + $0x88] sm:$0xff]  ;;  %v257_v6 = vld [vmem:[%s3553_s3 + $0x738] sm:$0xff] }
  0xce   :  { %1778 = vmatpush1.bf16.msra.mxu1 %v1777_v2  ;;  %1524 = vmatprep.subr.bf16.mxu0 %v1523_v3  ;;  %v252_v2 = vld [vmem:[%s3553_s3 + $0x710] sm:$0xff]  ;;  %v698_v3 = vld [vmem:[%s3552_s2 + $0x40] sm:$0xff]  ;;  %v255_v5 = vld [vmem:[%s3553_s3 + $0x728] sm:$0xff] }
  0xcf   :  { %1780 = vmatprep.subr.bf16.mxu1 %v1779_v7  ;;  %v1545_v7 = vpack.c.bf16 %v252_v2, %v250_v1  ;;  %v1800_v8 = vpack.c.bf16 %v707_v4, %v698_v3  ;;  %v1547_v9 = vpack.c.bf16 %v257_v6, %v255_v5  ;;  %v254_v10 = vld [vmem:[%s3553_s3 + $0x720] sm:$0xff]  ;;  %v256_v11 = vld [vmem:[%s3553_s3 + $0x730] sm:$0xff]  ;;  %v261_v16 = vld [vmem:[%s3553_s3 + $0x758] sm:$0xff] }
  0xd0   :  { %v716_v12 = vld [vmem:[%s3552_s2 + $0xd0] sm:$0xff]  ;;  %v1549_v17 = vpack.c.bf16 %v256_v11, %v254_v10  ;;  %v258_v21 = vld [vmem:[%s3553_s3 + $0x740] sm:$0xff]  ;;  %v743_v24 = vld [vmem:[%s3552_s2 + $0x1a8] sm:$0xff] }
  0xd1   :  { %1526 = vmatpush1.bf16.msra.mxu0 %v1525_v13  ;;  %v1902_v13 = vmov 0.0|0.0   ;;  %v260_v22 = vld [vmem:[%s3553_s3 + $0x750] sm:$0xff]  ;;  %v734_v23 = vld [vmem:[%s3552_s2 + $0x160] sm:$0xff]  ;;  %v263_v25 = vld [vmem:[%s3553_s3 + $0x768] sm:$0xff] }
  0xd2   :  { %1782 = vmatpush1.bf16.msra.mxu1 %v1781_v14  ;;  %1528 = vmatprep.subr.bf16.mxu0 %v1527_v15  ;;  %v725_v14 = vld [vmem:[%s3552_s2 + $0x118] sm:$0xff]  ;;  %v259_v15 = vld [vmem:[%s3553_s3 + $0x748] sm:$0xff]  ;;  %v262_v31 = vld [vmem:[%s3553_s3 + $0x760] sm:$0xff] }
  0xd3   :  { %1784 = vmatprep.subr.bf16.mxu1 %v1783_v19  ;;  %v1803_v18 = vpack.c.bf16 %v725_v14, %v716_v12  ;;  %v1551_v19 = vpack.c.bf16 %v261_v16, %v259_v15  ;;  %v264_v32 = vld [vmem:[%s3553_s3 + $0x770] sm:$0xff]  ;;  %v267_v35 = vld [vmem:[%s3553_s3 + $0x788] sm:$0xff]  ;;  %v269_v36 = vld [vmem:[%s3553_s3 + $0x798] sm:$0xff] }
  0xd4   :  { %v1557_v37 = vpack.c.bf16 %v264_v32, %v262_v31  ;;  %v1559_v39 = vpack.c.bf16 %v269_v36, %v267_v35  ;;  %v779_v43 = vld [vmem:[%s3552_s2 + $0x2c8] sm:$0xff]  ;;  %v273_v45 = vld [vmem:[%s3553_s3 + $0x7b8] sm:$0xff]  ;;  %v270_v48 = vld [vmem:[%s3553_s3 + $0x7a0] sm:$0xff] }
  0xd5   :  { %1530 = vmatpush1.bf16.msra.mxu0 %v1529_v26  ;;  %v265_v26 = vld [vmem:[%s3553_s3 + $0x778] sm:$0xff]  ;;  %v271_v44 = vld [vmem:[%s3553_s3 + $0x7a8] sm:$0xff]  ;;  %v272_v56 = vld [vmem:[%s3553_s3 + $0x7b0] sm:$0xff] }
  0xd6   :  { %1786 = vmatpush1.bf16.msra.mxu1 %v1785_v27  ;;  %1532 = vmatprep.subr.bf16.mxu0 %v1531_v28  ;;  %v1553_v27 = vpack.c.bf16 %v260_v22, %v258_v21  ;;  %v1806_v28 = vpack.c.bf16 %v743_v24, %v734_v23  ;;  %v1555_v30 = vpack.c.bf16 %v265_v26, %v263_v25  ;;  %v788_v49 = vld [vmem:[%s3552_s2 + $0x310] sm:$0xff]  ;;  %v806_v58 = vld [vmem:[%s3552_s2 + $0x3a0] sm:$0xff]  ;;  %v815_v60 = vld [vmem:[%s3552_s2 + $0x3e8] sm:$0xff] }
  0xd7   :  { %1788 = vmatprep.subr.bf16.mxu1 %v1787_v34  ;;  %v752_v34 = vld [vmem:[%s3552_s2 + $0x1f0] sm:$0xff]  ;;  %v1563_v47 = vpack.c.bf16 %v273_v45, %v271_v44  ;;  %v1565_v53 = vpack.c.bf16 %v272_v56, %v270_v48  ;;  %v1818_v3 = vpack.c.bf16 %v815_v60, %v806_v58  ;;  %v278_v5 = vld [vmem:[%s3553_s3 + $0x7e0] sm:$0xff]  ;;  %v851_v12 = vld [vmem:[%s3552_s2 + $0x508] sm:$0xff] }
  0xd8   :  { %v276_v57 = vld [vmem:[%s3553_s3 + $0x7d0] sm:$0xff]  ;;  %v842_v11 = vld [vmem:[%s3552_s2 + $0x4c0] sm:$0xff]  ;;  %v869_v16 = vld [vmem:[%s3552_s2 + $0x598] sm:$0xff] }
  0xd9   :  { %1534 = vmatpush1.bf16.msra.mxu0 %v1533_v40  ;;  %v266_v40 = vld [vmem:[%s3553_s3 + $0x780] sm:$0xff]  ;;  %v280_v6 = vld [vmem:[%s3553_s3 + $0x7f0] sm:$0xff]  ;;  %v1824_v14 = vpack.c.bf16 %v851_v12, %v842_v11  ;;  %v905_v22 = vld [vmem:[%s3552_s2 + $0x6b8] sm:$0xff] }
  0xda   :  { %1790 = vmatpush1.bf16.msra.mxu1 %v1789_v41  ;;  %1536 = vmatprep.subr.bf16.mxu0 %v1535_v42  ;;  %v268_v41 = vld [vmem:[%s3553_s3 + $0x790] sm:$0xff]  ;;  %v770_v42 = vld [vmem:[%s3552_s2 + $0x280] sm:$0xff]  ;;  %vm687_vm3 = vmor %vm686_vm2, %vm685_vm1 }
  0xdb   :  { %1792 = vmatprep.subr.bf16.mxu1 %v1791_v46  ;;  %v1561_v46 = vpack.c.bf16 %v268_v41, %v266_v40  ;;  %v1812_v29 = vpack.c.bf16 %v779_v43, %v770_v42  ;;  %v860_v15 = vld [vmem:[%s3552_s2 + $0x550] sm:$0xff] }
  0xdd   :  { %1538 = vmatpush1.bf16.msra.mxu0 %v1537_v50  ;;  %v797_v50 = vld [vmem:[%s3552_s2 + $0x358] sm:$0xff] }
  0xde   :  { %1794 = vmatpush1.bf16.msra.mxu1 %v1793_v51  ;;  %1540 = vmatprep.subr.bf16.mxu0 %v1539_v52  ;;  %v275_v51 = vld [vmem:[%s3553_s3 + $0x7c8] sm:$0xff]  ;;  %v277_v52 = vld [vmem:[%s3553_s3 + $0x7d8] sm:$0xff]  ;;  %v1815_v54 = vpack.c.bf16 %v797_v50, %v788_v49 }
  0xdf   :  { %1796 = vmatprep.subr.bf16.mxu1 %v1795_v55  ;;  %v1567_v20 = vpack.c.bf16 %v277_v52, %v275_v51  ;;  %v274_v55 = vld [vmem:[%s3553_s3 + $0x7c0] sm:$0xff] }
  0xe0   :  { %v1569_v2 = vpack.c.bf16 %v276_v57, %v274_v55 }
  0xe1   :  { %1542 = vmatpush1.bf16.msra.mxu0 %v1541_v61  ;;  %v279_v61 = vld [vmem:[%s3553_s3 + $0x7e8] sm:$0xff] }
  0xe2   :  { %1798 = vmatpush1.bf16.msra.mxu1 %v1797_v62  ;;  %1544 = vmatprep.subr.bf16.mxu0 %v1543_v63  ;;  %v281_v62 = vld [vmem:[%s3553_s3 + $0x7f8] sm:$0xff] }
  0xe3   :  { %1799 = vmatprep.subr.bf16.mxu1 %v1902_v13  ;;  %v1571_v4 = vpack.c.bf16 %v281_v62, %v279_v61 }
  0xe5   :  { %1189 = vmatmul.mubr.f32.vlgmr.msra.gmra.mrb[8].mxu1 %v3097_v0  ;;  %1546 = vmatpush1.bf16.msra.mxu0 %v1545_v7  ;;  %v824_v7 = vld [vmem:[%s3552_s2 + $0x430] sm:$0xff] }
  0xe6   :  { %1801 = vmatpush1.bf16.msra.mxu1 %v1800_v8  ;;  %1548 = vmatprep.subr.bf16.mxu0 %v1547_v9  ;;  %v833_v8 = vld [vmem:[%s3552_s2 + $0x478] sm:$0xff]  ;;  %v1573_v9 = vpack.c.bf16 %v280_v6, %v278_v5 }
  0xe7   :  { %1802 = vmatprep.subr.bf16.mxu1 %v1902_v13  ;;  %1318 = vmatprep.mubr.msk.f32.mxu1 %vm908_vm0, %v2324_v59  ;;  %v761_v59 = vld [vmem:[%s3552_s2 + $0x238] sm:$0xff]  ;;  %v1821_v10 = vpack.c.bf16 %v833_v8, %v824_v7 }
  0xe8   :  { %v1809_v38 = vpack.c.bf16 %v761_v59, %v752_v34 }
  0xe9   :  { %1550 = vmatpush1.bf16.msra.mxu0 %v1549_v17  ;;  %v1827_v17 = vpack.c.bf16 %v869_v16, %v860_v15 }
  0xea   :  { %1804 = vmatpush1.bf16.msra.mxu1 %v1803_v18  ;;  %1552 = vmatprep.subr.bf16.mxu0 %v1551_v19  ;;  %v878_v18 = vld [vmem:[%s3552_s2 + $0x5e0] sm:$0xff]  ;;  %v887_v19 = vld [vmem:[%s3552_s2 + $0x628] sm:$0xff] }
  0xeb   :  { %1805 = vmatprep.subr.bf16.mxu1 %v1902_v13  ;;  %v1830_v21 = vpack.c.bf16 %v887_v19, %v878_v18 }
  0xed   :  { %1554 = vmatpush1.bf16.msra.mxu0 %v1553_v27 }
  0xee   :  { %1807 = vmatpush1.bf16.msra.mxu1 %v1806_v28  ;;  %1556 = vmatprep.subr.bf16.mxu0 %v1555_v30 }
  0xef   :  { %1808 = vmatprep.subr.bf16.mxu1 %v1902_v13 }
  0xf1   :  { %1558 = vmatpush1.bf16.msra.mxu0 %v1557_v37 }
  0xf2   :  { %1810 = vmatpush1.bf16.msra.mxu1 %v1809_v38  ;;  %1560 = vmatprep.subr.bf16.mxu0 %v1559_v39 }
  0xf3   :  { %1811 = vmatprep.subr.bf16.mxu1 %v1902_v13 }
  0xf5   :  { %1562 = vmatpush1.bf16.msra.mxu0 %v1561_v46 }
  0xf6   :  { %1813 = vmatpush1.bf16.msra.mxu1 %v1812_v29  ;;  %1564 = vmatprep.subr.bf16.mxu0 %v1563_v47 }
  0xf7   :  { %1814 = vmatprep.subr.bf16.mxu1 %v1902_v13 }
  0xf8   :  { %v676_v63 = vpop.f32.mrb[0].mxu1 }
  0xf9   :  { %v3479_v1 = vpop.f32.mrb[1].mxu1  ;;  %1566 = vmatpush1.bf16.msra.mxu0 %v1565_v53 }
  0xfa   :  { %1816 = vmatpush1.bf16.msra.mxu1 %v1815_v54  ;;  %1568 = vmatprep.subr.bf16.mxu0 %v1567_v20 }
  0xfb   :  { %1817 = vmatprep.subr.bf16.mxu1 %v1902_v13 }
  0xfd   :  { %1570 = vmatpush1.bf16.msra.mxu0 %v1569_v2 }
  0xfe   :  { %1819 = vmatpush1.bf16.msra.mxu1 %v1818_v3  ;;  %1572 = vmatprep.subr.bf16.mxu0 %v1571_v4 }
  0xff   :  { %1820 = vmatprep.subr.bf16.mxu1 %v1902_v13 }
 0x101   :  { %1574 = vmatpush1.bf16.msra.mxu0 %v1573_v9 }
 0x102   :  { %1822 = vmatpush1.bf16.msra.mxu1 %v1821_v10 }
 0x103   :  { %1823 = vmatprep.subr.bf16.mxu1 %v1902_v13 }
 0x104   :  { %604 = vmatmul.mubr.f32.vlgmr.msra.gmra.mrb[0].mxu0 %v3162_v33  ;;  %v896_v33 = vld [vmem:[%s3552_s2 + $0x670] sm:$0xff]  ;;  %s1903_s2 = smov [#allocation2]  }
 0x105   :  { %v1833_v23 = vpack.c.bf16 %v905_v22, %v896_v33  ;;  %s1292_s20 = sshll.u32 %s1903_s2, 4  ;;  %s1293_s20 = int_to_ptr.vmem [resolvable:$true] %s1292_s20 }
 0x106   :  { %1825 = vmatpush1.bf16.msra.mxu1 %v1824_v14  ;;  %s1853_s21 = scalar_lea.vmem %s1293_s20, 128  ;;  %p1858_p1 = scmp.lt.s32.totalorder %s1293_s20, %s1293_s20 }
 0x107   :  { %1826 = vmatprep.subr.bf16.mxu1 %v1902_v13  ;;  %p1854_p0 = scmp.ne.s32.totalorder %s1293_s20, %s1853_s21  ;;  %p1859_p2 = scmp.lt.s32.totalorder %s1853_s21, %s1853_s21 }
 0x109   :  { %p1860_p3 = por %p1859_p2, %p1858_p1 }
 0x10a   :  { %1828 = vmatpush1.bf16.msra.mxu1 %v1827_v17 }
 0x10b   :  { %1829 = vmatprep.subr.bf16.mxu1 %v1902_v13  ;;  %p1861_p4 = pnand %p1860_p3, %p1854_p0 }
 0x10e   :  { %1831 = vmatpush1.bf16.msra.mxu1 %v1830_v21 }
 0x10f   :  { %1832 = vmatprep.subr.bf16.mxu1 %v1902_v13 }
 0x112   :  { %1834 = vmatpush1.bf16.msra.mxu1 %v1833_v23 }
 0x115   :  { %1260 = vmatmul.mubr.f32.vlgmr.msra.gmra.mrb[10].mxu1 %v3097_v0 }
 0x128   :  { %v977_v24 = vpop.f32.mrb[2].mxu1 }
 0x129   :  { %v979_v25 = vpop.f32.mrb[3].mxu1 }
 0x12a   :  { %v1273_v26 = vcombine.low %v977_v24, %v979_v25 }
 0x12c   :  { %1281 = vst [vmem:[#allocation4] sm:$0xff] %v1273_v26 }
 0x158   :  { %v1048_v27 = vpop.f32.mrb[4].mxu1 }
 0x159   :  { %v1050_v28 = vpop.f32.mrb[5].mxu1 }
 0x15a   :  { %v1274_v30 = vcombine.low %v1048_v27, %v1050_v28 }
 0x15c   :  { %1282 = vst [vmem:[#allocation4 + $0x8] sm:$0xff] %v1274_v30 }
 0x188   :  { %v1119_v31 = vpop.f32.mrb[6].mxu1 }
 0x189   :  { %v1121_v32 = vpop.f32.mrb[7].mxu1 }
 0x18a   :  { %v1275_v34 = vcombine.low %v1119_v31, %v1121_v32 }
 0x18c   :  { %1283 = vst [vmem:[#allocation4 + $0x10] sm:$0xff] %v1275_v34 }
 0x1b8   :  { %v1190_v59 = vpop.f32.mrb[8].mxu1 }
 0x1b9   :  { %v1192_v35 = vpop.f32.mrb[9].mxu1 }
 0x1ba   :  { %v1276_v36 = vcombine.low %v1190_v59, %v1192_v35 }
 0x1bc   :  { %1284 = vst [vmem:[#allocation4 + $0x18] sm:$0xff] %v1276_v36 }
 0x1d7   :  { %v605_v13 = vpop.f32.mrb[0].mxu0 }
 0x1d8   :  { %v1835_v0 = vadd.f32 %v676_v63, %v605_v13  ;;  %v607_v37 = vpop.f32.mrb[1].mxu0 }
 0x1d9   :  { %v1836_v38 = vadd.f32 %v3479_v1, %v607_v37 }
 0x1db   :  { %v683_v39 = vcombine.low %v1835_v0, %v1836_v38 }
 0x1dd   :  { %688 = vst.msk [vmem:[#allocation2] sm:$0xff] %vm687_vm3, %v683_v39 }
 0x1de   :  { %1864 = shalt.err (!%p1861_p4)
}
 0x1df   :  { %s1865_s24 = scalar_lea.hbm %s3554_s4, 128 }
 0x1e0   :  { %p1866_p5 = scmp.ne.s32.totalorder %s3554_s4, %s1865_s24  ;;  %p1869_p6 = scmp.lt.u32.totalorder %s1865_s24, %s3554_s4 }
 0x1e2   :  { %p1871_p7 = pnand %p1869_p6, %p1866_p5 }
 0x1e4   :  { %1874 = shalt.err (!%p1871_p7)
}
 0x1e5   :  { %1295 = dma.vmem_to_hbm [thread:$0]  %s1293_s20, 128, %s3554_s4, [#allocation3]  }
 0x1e6   :  { %s1904_s30 = smov [#allocation4]  }
 0x1e7   :  { %s1302_s6 = sshll.u32 %s1904_s30, 4  ;;  %s1303_s6 = int_to_ptr.vmem [resolvable:$true] %s1302_s6 }
 0x1e8   :  { %v1261_v40 = vpop.f32.mrb[10].mxu1  ;;  %s1875_s7 = scalar_lea.vmem %s1303_s6, 576  ;;  %p1880_p9 = scmp.lt.s32.totalorder %s1303_s6, %s1303_s6 }
 0x1e9   :  { %1285 = vst [vmem:[#allocation4 + $0x20] sm:$0xf] %v1261_v40  ;;  %v1263_v41 = vpop.f32.mrb[11].mxu1  ;;  %p1876_p8 = scmp.ne.s32.totalorder %s1303_s6, %s1875_s7  ;;  %p1881_p10 = scmp.lt.s32.totalorder %s1875_s7, %s1875_s7 }
 0x1eb   :  { %p1882_p11 = por %p1881_p10, %p1880_p9 }
 0x1ed   :  { %p1883_p12 = pnand %p1882_p11, %p1876_p8 }
 0x1ef   :  { %1886 = shalt.err (!%p1883_p12)
}
 0x1f0   :  { %s1887_s9 = scalar_lea.hbm %s3555_s5, 576 }
 0x1f1   :  { %p1888_p13 = scmp.ne.s32.totalorder %s3555_s5, %s1887_s9  ;;  %p1891_p0 = scmp.lt.u32.totalorder %s1887_s9, %s3555_s5 }
 0x1f3   :  { %p1893_p1 = pnand %p1891_p0, %p1888_p13 }
 0x1f5   :  { %1896 = shalt.err (!%p1893_p1)
}
 0x1f6   :  { %1305 = dma.vmem_to_hbm [thread:$0]  %s1303_s6, 576, %s3555_s5, [#allocation5]  }
 0x1f7   :  { %1897 = dma.done.wait [#allocation3], 128  }
 0x1f8   :  { %1898 = vsyncadd [#allocation3], 4294967168 }
 0x1f9   :  { %1899 = dma.done.wait [#allocation5], 576  }
 0x1fa   :  { %1900 = vsyncadd [#allocation5], 4294966720 }
 0x1fb   :  { %1312 = vsyncpa [#allocation3], 1 }
 0x1fc   :  { %1313 = vsyncpa [#allocation5], 1 }

</bundles_post_ra>
